<compile_context>
chip_gen: v6e
topology: v6e:2x2x1
jax: 0.10.0
libtpu: 0.0.40
codegen_flags: <defaults>
</compile_context>

<pallas_src>
import functools

import jax
import jax.numpy as jnp
from jax.experimental import pallas as pl
from jax.experimental.pallas import tpu as pltpu

LEAK = 0.2      # nn.LeakyReLU(0.2)
BN_EPS = 0.8    # nn.BatchNorm1d(out_feat, 0.8) -> eps = 0.8
ROW_TILE = 8    # rows of the flattened (B*C, H*W) image per grid step


def _leaky(x):
    return jnp.where(x > 0, x, LEAK * x)


# ---------------------------------------------------------------------------
# Kernel 1: fused MLP
# ---------------------------------------------------------------------------
def mlp_kernel(x_ref, w1_ref, b1_ref,
               w2_ref, b2_ref, g2_ref, be2_ref,
               w3_ref, b3_ref, g3_ref, be3_ref,
               w4_ref, b4_ref, out_ref):
    def dot(h, w_ref):
        # MXU is bf16-native on v5e/v6e/v7x: bf16 operands, f32 accumulation.
        return jnp.dot(h.astype(jnp.bfloat16), w_ref[...],
                       preferred_element_type=jnp.float32)

    def bn(h, g_ref, be_ref):
        # BatchNorm1d default (training) mode: biased batch stats, eps=0.8, f32.
        mu = jnp.mean(h, axis=0, keepdims=True)
        var = jnp.mean((h - mu) ** 2, axis=0, keepdims=True)
        return (h - mu) * jax.lax.rsqrt(var + BN_EPS) * g_ref[...] + be_ref[...]

    h = _leaky(dot(x_ref[...], w1_ref) + b1_ref[...])
    h = _leaky(bn(dot(h, w2_ref) + b2_ref[...], g2_ref, be2_ref))
    h = _leaky(bn(dot(h, w3_ref) + b3_ref[...], g3_ref, be3_ref))
    out_ref[...] = dot(h, w4_ref) + b4_ref[...]


def _full_spec(a):
    nd = a.ndim
    return pl.BlockSpec(a.shape, lambda i, nd=nd: (0,) * nd)


def run_mlp(x, params):
    B = x.shape[0]
    out_dim = params["w4"].shape[1]
    bf16 = lambda w: w.astype(jnp.bfloat16)   # halves weight DMA, MXU-native
    args = [x,
            bf16(params["w1"]), params["b1"],
            bf16(params["w2"]), params["b2"], params["g2"], params["be2"],
            bf16(params["w3"]), params["b3"], params["g3"], params["be3"],
            bf16(params["w4"]), params["b4"]]
    # TODO(synk): at production B, tile over the batch and/or K of w1 (B=2 keeps
    # the MXU rows >90% padding; not worth a grid at these demo shapes).
    return pl.pallas_call(
        mlp_kernel,
        out_shape=jax.ShapeDtypeStruct((B, out_dim), jnp.float32),
        grid=(1,),
        in_specs=[_full_spec(a) for a in args],
        out_specs=pl.BlockSpec((B, out_dim), lambda i: (0, 0)),
    )(*args)


# ---------------------------------------------------------------------------
# Kernel 2: mask threshold + ksize x ksize zero-padded median filter + merge
# ---------------------------------------------------------------------------
def _cmpswap(v, i, j):
    a, b = v[i], v[j]
    v[i] = jnp.minimum(a, b)
    v[j] = jnp.maximum(a, b)


def _streaming_median(window_iter, n):
    """Exact k-th order statistic (k=(n-1)//2 == torch.median's lower median)
    of n equally-shaped arrays via forgetful min/max selection.

    Working set of k+2 values: each round one global min and one global max are
    discarded (while |work| + #previously-discarded >= k+2 neither can be the
    overall median) and one fresh window is pulled in lazily.  ~4*s min/max ops
    per round (~330 total for n=25) and <=14 live operands, vs ~1250 VALU ops
    and 25+ live values for the O(n^2) rank-compare approach.
    """
    k = (n - 1) // 2
    if n == 1:
        return next(window_iter)
    work = [next(window_iter) for _ in range(k + 2)]
    for _ in range(n - (k + 2)):
        s = len(work)
        for i in range(1, s):              # global min -> work[0]
            _cmpswap(work, 0, i)
        for i in range(2, s):              # global max -> work[s-1]
            _cmpswap(work, i - 1, i)
        work = work[1:-1]                  # forget min & max
        work.append(next(window_iter))
    a, b, c = work                         # exactly 3 left for any odd n >= 3
    return jnp.maximum(jnp.minimum(a, b), jnp.minimum(jnp.maximum(a, b), c))


def mask_median_kernel(logits_ref, sample_ref, out_ref, *, H, W, ksize):
    HW = H * W
    pad = (ksize - 1) // 2

    logits = logits_ref[...]                   # (ROW_TILE, H*W), lane-dense
    sample = sample_ref[...]
    maskb = logits > 0.0                       # torch.where(mask > 0, 1, 0)
    masked = jnp.where(maskb, sample, 0.0)     # p_img = sample * mask

    # Flat spatial coordinates (per-lane constants).
    pos = jax.lax.broadcasted_iota(jnp.int32, sample.shape, 1)
    col = pos % W
    row = pos // W

    # Boundary masks are derived by rolling the iota with the *same* primitive
    # and shift as the data, so the kernel is independent of the roll
    # convention: a tap is valid iff its source coordinate moved by <= pad.
    cvalid = {}
    for dj in range(-pad, pad + 1):
        if dj != 0:
            rcol = pltpu.roll(col, dj % HW, 1)
            cvalid[dj] = jnp.abs(rcol - col) <= pad

    def windows():
        # Lazy generator of the ksize*ksize zero-padded neighbourhoods: lane
        # rotations (XLU slot, idle while the VPU runs the median) + masking.
        for di in range(-pad, pad + 1):
            if di == 0:
                rowed = masked
            else:
                shift = (di * W) % HW
                rrow = pltpu.roll(row, shift, 1)
                rowed = jnp.where(jnp.abs(rrow - row) <= pad,
                                  pltpu.roll(masked, shift, 1), 0.0)
            for dj in range(-pad, pad + 1):
                if dj == 0:
                    yield rowed
                else:
                    yield jnp.where(cvalid[dj],
                                    pltpu.roll(rowed, dj % HW, 1), 0.0)

    med = _streaming_median(windows(), ksize * ksize)

    # sample[mask == 0] = p_img[mask == 0]
    out_ref[...] = jnp.where(maskb, sample, med)


def run_mask_median(logits, sample, ksize):
    assert ksize % 2 == 1, "median window must be odd (torch lower median + symmetric pad)"
    B, C, H, W = sample.shape
    assert H >= ksize and W >= ksize
    HW = H * W
    assert logits.shape == (B, HW)
    R = B * C
    Rpad = -(-R // ROW_TILE) * ROW_TILE

    # Lane-dense layout: one flattened H*W image per row.  Broadcasting the
    # mask logits over channels here implements mask.repeat(1, C, 1, 1).
    logits_rows = jnp.broadcast_to(logits.reshape(B, 1, HW), (B, C, HW)).reshape(R, HW)
    sample_rows = sample.reshape(R, HW)
    if Rpad != R:
        logits_rows = jnp.pad(logits_rows, ((0, Rpad - R), (0, 0)))
        sample_rows = jnp.pad(sample_rows, ((0, Rpad - R), (0, 0)))

    out_rows = pl.pallas_call(
        functools.partial(mask_median_kernel, H=H, W=W, ksize=ksize),
        out_shape=jax.ShapeDtypeStruct((Rpad, HW), sample.dtype),
        grid=(Rpad // ROW_TILE,),
        in_specs=[pl.BlockSpec((ROW_TILE, HW), lambda i: (i, 0)),
                  pl.BlockSpec((ROW_TILE, HW), lambda i: (i, 0))],
        out_specs=pl.BlockSpec((ROW_TILE, HW), lambda i: (i, 0)),
        compiler_params=pltpu.CompilerParams(
            dimension_semantics=("parallel",)),   # shard rows across TCs (v7x)
    )(logits_rows, sample_rows)
    return out_rows[:R].reshape(B, C, H, W)


# ---------------------------------------------------------------------------
# Parameter init (mirrors init_weights: xavier_normal_ weights, zero Linear
# biases, BN weight=1 / bias=0)
# ---------------------------------------------------------------------------
def init_params(key, in_dim, out_dim):
    ks = jax.random.split(key, 4)

    def xavier(k, fi, fo):
        std = (2.0 / (fi + fo)) ** 0.5
        return std * jax.random.normal(k, (fi, fo), jnp.float32)

    p = {}
    p["w1"] = xavier(ks[0], in_dim, 128)
    p["b1"] = jnp.zeros((1, 128), jnp.float32)
    p["w2"] = xavier(ks[1], 128, 256)
    p["b2"] = jnp.zeros((1, 256), jnp.float32)
    p["g2"] = jnp.ones((1, 256), jnp.float32)
    p["be2"] = jnp.zeros((1, 256), jnp.float32)
    p["w3"] = xavier(ks[2], 256, 512)
    p["b3"] = jnp.zeros((1, 512), jnp.float32)
    p["g3"] = jnp.ones((1, 512), jnp.float32)
    p["be3"] = jnp.zeros((1, 512), jnp.float32)
    p["w4"] = xavier(ks[3], 512, out_dim)
    p["b4"] = jnp.zeros((1, out_dim), jnp.float32)
    return p


def generator_mlp_forward(perturb, sample, params, out_channel, ksize):
    assert out_channel == 1, "module's mask repeat/broadcast only consistent for out_channel == 1"
    B = perturb.shape[0]
    logits = run_mlp(perturb.reshape(B, -1), params)   # perturb.view(B, -1)
    return run_mask_median(logits, sample, ksize)


# Pure-JAX reference of the mask / median-dilate / merge stage (exact, since
# that stage only uses selects and order statistics).
def _ref_mask_median(logits, sample, ksize):
    B, C, H, W = sample.shape
    pad = (ksize - 1) // 2
    k = (ksize * ksize - 1) // 2
    mask = jnp.broadcast_to(logits.reshape(B, 1, H, W) > 0, sample.shape)
    masked = jnp.where(mask, sample, 0.0)
    padded = jnp.pad(masked, ((0, 0), (0, 0), (pad, pad), (pad, pad)))
    wins = jnp.stack([padded[:, :, di:di + H, dj:dj + W]
                      for di in range(ksize) for dj in range(ksize)], axis=-1)
    med = jnp.sort(wins, axis=-1)[..., k]
    return jnp.where(mask, sample, med)


if __name__ == "__main__":
    B, C, H, W = 2, 3, 16, 16
    ksize = 5
    out_channel = 1
    in_dim = C * H * W

    key = jax.random.PRNGKey(0)
    kp, kx, ksmp = jax.random.split(key, 3)
    params = init_params(kp, in_dim, out_channel * H * W)
    perturb = jax.random.normal(kx, (B, C, H, W), jnp.float32)
    sample = jax.random.normal(ksmp, (B, C, H, W), jnp.float32)

    out = generator_mlp_forward(perturb, sample, params, out_channel, ksize)
    out = jax.block_until_ready(out)
    assert out.shape == (B, C, H, W) and out.dtype == jnp.float32

    # Check the mask/median/merge kernel against the pure-JAX reference, driven
    # by the same kernel-produced logits (the MLP itself uses bf16 MXU operands).
    logits = run_mlp(perturb.reshape(B, -1), params)
    ref = _ref_mask_median(logits, sample, ksize)
    assert bool(jnp.allclose(out, ref, atol=1e-6, rtol=0.0)), \
        float(jnp.max(jnp.abs(out - ref)))

    print("KERNEL_OK")
</pallas_src>

<mosaic_0001>
module attributes {stable_mosaic.version = 11 : i64} {
  func.func @mlp_kernel(%arg0: i32, %arg1: memref<2x768xf32, #tpu.memory_space<vmem>>, %arg2: memref<768x128xbf16, #tpu.memory_space<vmem>>, %arg3: memref<1x128xf32, #tpu.memory_space<vmem>>, %arg4: memref<128x256xbf16, #tpu.memory_space<vmem>>, %arg5: memref<1x256xf32, #tpu.memory_space<vmem>>, %arg6: memref<1x256xf32, #tpu.memory_space<vmem>>, %arg7: memref<1x256xf32, #tpu.memory_space<vmem>>, %arg8: memref<256x512xbf16, #tpu.memory_space<vmem>>, %arg9: memref<1x512xf32, #tpu.memory_space<vmem>>, %arg10: memref<1x512xf32, #tpu.memory_space<vmem>>, %arg11: memref<1x512xf32, #tpu.memory_space<vmem>>, %arg12: memref<512x256xbf16, #tpu.memory_space<vmem>>, %arg13: memref<1x256xf32, #tpu.memory_space<vmem>>, %arg14: memref<2x256xf32, #tpu.memory_space<vmem>>) attributes {dimension_semantics = [#tpu.dimension_semantics<arbitrary>], iteration_bounds = array<i64: 1>, scalar_prefetch = 0 : i64, scratch_operands = 0 : i64, tpu.core_type = #tpu.core_type<tc>, window_params = [{pipeline_mode = #tpu.pipeline_mode<synchronous>, transform_indices = @transform_0, window_bounds = array<i64: 2, 768>}, {pipeline_mode = #tpu.pipeline_mode<synchronous>, transform_indices = @transform_1, window_bounds = array<i64: 768, 128>}, {pipeline_mode = #tpu.pipeline_mode<synchronous>, transform_indices = @transform_2, window_bounds = array<i64: 1, 128>}, {pipeline_mode = #tpu.pipeline_mode<synchronous>, transform_indices = @transform_3, window_bounds = array<i64: 128, 256>}, {pipeline_mode = #tpu.pipeline_mode<synchronous>, transform_indices = @transform_4, window_bounds = array<i64: 1, 256>}, {pipeline_mode = #tpu.pipeline_mode<synchronous>, transform_indices = @transform_5, window_bounds = array<i64: 1, 256>}, {pipeline_mode = #tpu.pipeline_mode<synchronous>, transform_indices = @transform_6, window_bounds = array<i64: 1, 256>}, {pipeline_mode = #tpu.pipeline_mode<synchronous>, transform_indices = @transform_7, window_bounds = array<i64: 256, 512>}, {pipeline_mode = #tpu.pipeline_mode<synchronous>, transform_indices = @transform_8, window_bounds = array<i64: 1, 512>}, {pipeline_mode = #tpu.pipeline_mode<synchronous>, transform_indices = @transform_9, window_bounds = array<i64: 1, 512>}, {pipeline_mode = #tpu.pipeline_mode<synchronous>, transform_indices = @transform_10, window_bounds = array<i64: 1, 512>}, {pipeline_mode = #tpu.pipeline_mode<synchronous>, transform_indices = @transform_11, window_bounds = array<i64: 512, 256>}, {pipeline_mode = #tpu.pipeline_mode<synchronous>, transform_indices = @transform_12, window_bounds = array<i64: 1, 256>}, {pipeline_mode = #tpu.pipeline_mode<synchronous>, transform_indices = @transform_13, window_bounds = array<i64: 2, 256>}]} {
    %c0 = arith.constant 0 : index
    %c0_0 = arith.constant 0 : index
    %0 = vector.load %arg1[%c0, %c0_0] : memref<2x768xf32, #tpu.memory_space<vmem>>, vector<2x768xf32>
    %1 = arith.truncf %0 : vector<2x768xf32> to vector<2x768xbf16>
    %c0_1 = arith.constant 0 : index
    %c0_2 = arith.constant 0 : index
    %2 = vector.load %arg2[%c0_1, %c0_2] : memref<768x128xbf16, #tpu.memory_space<vmem>>, vector<768x128xbf16>
    %cst = arith.constant dense<0.000000e+00> : vector<2x128xf32>
    %3 = tpu.matmul %1, %2, %cst {dimension_numbers = #tpu.dot_dimension_numbers<[1], [0], [0], [1], [0, 0, 1, 1], [], []>} : vector<2x768xbf16>, vector<768x128xbf16>, vector<2x128xf32> -> vector<2x128xf32>
    %c0_3 = arith.constant 0 : index
    %c0_4 = arith.constant 0 : index
    %4 = vector.load %arg3[%c0_3, %c0_4] : memref<1x128xf32, #tpu.memory_space<vmem>>, vector<1x128xf32>
    %5 = vector.broadcast %4 : vector<1x128xf32> to vector<2x128xf32>
    %6 = arith.addf %3, %5 : vector<2x128xf32>
    %cst_5 = arith.constant 0.000000e+00 : f32
    %7 = vector.broadcast %cst_5 : f32 to vector<2x128xf32>
    %8 = arith.cmpf ogt, %6, %7 : vector<2x128xf32>
    %cst_6 = arith.constant 2.000000e-01 : f32
    %9 = vector.broadcast %cst_6 : f32 to vector<2x128xf32>
    %10 = arith.mulf %9, %6 : vector<2x128xf32>
    %11 = arith.select %8, %6, %10 : vector<2x128xi1>, vector<2x128xf32>
    %12 = arith.truncf %11 : vector<2x128xf32> to vector<2x128xbf16>
    %c0_7 = arith.constant 0 : index
    %c0_8 = arith.constant 0 : index
    %13 = vector.load %arg4[%c0_7, %c0_8] : memref<128x256xbf16, #tpu.memory_space<vmem>>, vector<128x256xbf16>
    %cst_9 = arith.constant dense<0.000000e+00> : vector<2x256xf32>
    %14 = tpu.matmul %12, %13, %cst_9 {dimension_numbers = #tpu.dot_dimension_numbers<[1], [0], [0], [1], [0, 0, 1, 1], [], []>} : vector<2x128xbf16>, vector<128x256xbf16>, vector<2x256xf32> -> vector<2x256xf32>
    %c0_10 = arith.constant 0 : index
    %c0_11 = arith.constant 0 : index
    %15 = vector.load %arg5[%c0_10, %c0_11] : memref<1x256xf32, #tpu.memory_space<vmem>>, vector<1x256xf32>
    %16 = vector.broadcast %15 : vector<1x256xf32> to vector<2x256xf32>
    %17 = arith.addf %14, %16 : vector<2x256xf32>
    %cst_12 = arith.constant dense<0.000000e+00> : vector<256xf32>
    %18 = vector.multi_reduction <add>, %17, %cst_12 [0] : vector<2x256xf32> to vector<256xf32>
    %19 = vector.shape_cast %18 : vector<256xf32> to vector<1x256xf32>
    %cst_13 = arith.constant 2.000000e+00 : f32
    %20 = vector.broadcast %cst_13 : f32 to vector<1x256xf32>
    %21 = arith.divf %19, %20 : vector<1x256xf32>
    %22 = vector.broadcast %21 : vector<1x256xf32> to vector<2x256xf32>
    %23 = arith.subf %17, %22 : vector<2x256xf32>
    %24 = arith.mulf %23, %23 : vector<2x256xf32>
    %cst_14 = arith.constant dense<0.000000e+00> : vector<256xf32>
    %25 = vector.multi_reduction <add>, %24, %cst_14 [0] : vector<2x256xf32> to vector<256xf32>
    %26 = vector.shape_cast %25 : vector<256xf32> to vector<1x256xf32>
    %cst_15 = arith.constant 2.000000e+00 : f32
    %27 = vector.broadcast %cst_15 : f32 to vector<1x256xf32>
    %28 = arith.divf %26, %27 : vector<1x256xf32>
    %29 = vector.broadcast %21 : vector<1x256xf32> to vector<2x256xf32>
    %30 = arith.subf %17, %29 : vector<2x256xf32>
    %cst_16 = arith.constant 8.000000e-01 : f32
    %31 = vector.broadcast %cst_16 : f32 to vector<1x256xf32>
    %32 = arith.addf %28, %31 : vector<1x256xf32>
    %33 = math.rsqrt %32 : vector<1x256xf32>
    %34 = vector.broadcast %33 : vector<1x256xf32> to vector<2x256xf32>
    %35 = arith.mulf %30, %34 : vector<2x256xf32>
    %c0_17 = arith.constant 0 : index
    %c0_18 = arith.constant 0 : index
    %36 = vector.load %arg6[%c0_17, %c0_18] : memref<1x256xf32, #tpu.memory_space<vmem>>, vector<1x256xf32>
    %37 = vector.broadcast %36 : vector<1x256xf32> to vector<2x256xf32>
    %38 = arith.mulf %35, %37 : vector<2x256xf32>
    %c0_19 = arith.constant 0 : index
    %c0_20 = arith.constant 0 : index
    %39 = vector.load %arg7[%c0_19, %c0_20] : memref<1x256xf32, #tpu.memory_space<vmem>>, vector<1x256xf32>
    %40 = vector.broadcast %39 : vector<1x256xf32> to vector<2x256xf32>
    %41 = arith.addf %38, %40 : vector<2x256xf32>
    %cst_21 = arith.constant 0.000000e+00 : f32
    %42 = vector.broadcast %cst_21 : f32 to vector<2x256xf32>
    %43 = arith.cmpf ogt, %41, %42 : vector<2x256xf32>
    %cst_22 = arith.constant 2.000000e-01 : f32
    %44 = vector.broadcast %cst_22 : f32 to vector<2x256xf32>
    %45 = arith.mulf %44, %41 : vector<2x256xf32>
    %46 = arith.select %43, %41, %45 : vector<2x256xi1>, vector<2x256xf32>
    %47 = arith.truncf %46 : vector<2x256xf32> to vector<2x256xbf16>
    %c0_23 = arith.constant 0 : index
    %c0_24 = arith.constant 0 : index
    %48 = vector.load %arg8[%c0_23, %c0_24] : memref<256x512xbf16, #tpu.memory_space<vmem>>, vector<256x512xbf16>
    %cst_25 = arith.constant dense<0.000000e+00> : vector<2x512xf32>
    %49 = tpu.matmul %47, %48, %cst_25 {dimension_numbers = #tpu.dot_dimension_numbers<[1], [0], [0], [1], [0, 0, 1, 1], [], []>} : vector<2x256xbf16>, vector<256x512xbf16>, vector<2x512xf32> -> vector<2x512xf32>
    %c0_26 = arith.constant 0 : index
    %c0_27 = arith.constant 0 : index
    %50 = vector.load %arg9[%c0_26, %c0_27] : memref<1x512xf32, #tpu.memory_space<vmem>>, vector<1x512xf32>
    %51 = vector.broadcast %50 : vector<1x512xf32> to vector<2x512xf32>
    %52 = arith.addf %49, %51 : vector<2x512xf32>
    %cst_28 = arith.constant dense<0.000000e+00> : vector<512xf32>
    %53 = vector.multi_reduction <add>, %52, %cst_28 [0] : vector<2x512xf32> to vector<512xf32>
    %54 = vector.shape_cast %53 : vector<512xf32> to vector<1x512xf32>
    %cst_29 = arith.constant 2.000000e+00 : f32
    %55 = vector.broadcast %cst_29 : f32 to vector<1x512xf32>
    %56 = arith.divf %54, %55 : vector<1x512xf32>
    %57 = vector.broadcast %56 : vector<1x512xf32> to vector<2x512xf32>
    %58 = arith.subf %52, %57 : vector<2x512xf32>
    %59 = arith.mulf %58, %58 : vector<2x512xf32>
    %cst_30 = arith.constant dense<0.000000e+00> : vector<512xf32>
    %60 = vector.multi_reduction <add>, %59, %cst_30 [0] : vector<2x512xf32> to vector<512xf32>
    %61 = vector.shape_cast %60 : vector<512xf32> to vector<1x512xf32>
    %cst_31 = arith.constant 2.000000e+00 : f32
    %62 = vector.broadcast %cst_31 : f32 to vector<1x512xf32>
    %63 = arith.divf %61, %62 : vector<1x512xf32>
    %64 = vector.broadcast %56 : vector<1x512xf32> to vector<2x512xf32>
    %65 = arith.subf %52, %64 : vector<2x512xf32>
    %cst_32 = arith.constant 8.000000e-01 : f32
    %66 = vector.broadcast %cst_32 : f32 to vector<1x512xf32>
    %67 = arith.addf %63, %66 : vector<1x512xf32>
    %68 = math.rsqrt %67 : vector<1x512xf32>
    %69 = vector.broadcast %68 : vector<1x512xf32> to vector<2x512xf32>
    %70 = arith.mulf %65, %69 : vector<2x512xf32>
    %c0_33 = arith.constant 0 : index
    %c0_34 = arith.constant 0 : index
    %71 = vector.load %arg10[%c0_33, %c0_34] : memref<1x512xf32, #tpu.memory_space<vmem>>, vector<1x512xf32>
    %72 = vector.broadcast %71 : vector<1x512xf32> to vector<2x512xf32>
    %73 = arith.mulf %70, %72 : vector<2x512xf32>
    %c0_35 = arith.constant 0 : index
    %c0_36 = arith.constant 0 : index
    %74 = vector.load %arg11[%c0_35, %c0_36] : memref<1x512xf32, #tpu.memory_space<vmem>>, vector<1x512xf32>
    %75 = vector.broadcast %74 : vector<1x512xf32> to vector<2x512xf32>
    %76 = arith.addf %73, %75 : vector<2x512xf32>
    %cst_37 = arith.constant 0.000000e+00 : f32
    %77 = vector.broadcast %cst_37 : f32 to vector<2x512xf32>
    %78 = arith.cmpf ogt, %76, %77 : vector<2x512xf32>
    %cst_38 = arith.constant 2.000000e-01 : f32
    %79 = vector.broadcast %cst_38 : f32 to vector<2x512xf32>
    %80 = arith.mulf %79, %76 : vector<2x512xf32>
    %81 = arith.select %78, %76, %80 : vector<2x512xi1>, vector<2x512xf32>
    %82 = arith.truncf %81 : vector<2x512xf32> to vector<2x512xbf16>
    %c0_39 = arith.constant 0 : index
    %c0_40 = arith.constant 0 : index
    %83 = vector.load %arg12[%c0_39, %c0_40] : memref<512x256xbf16, #tpu.memory_space<vmem>>, vector<512x256xbf16>
    %cst_41 = arith.constant dense<0.000000e+00> : vector<2x256xf32>
    %84 = tpu.matmul %82, %83, %cst_41 {dimension_numbers = #tpu.dot_dimension_numbers<[1], [0], [0], [1], [0, 0, 1, 1], [], []>} : vector<2x512xbf16>, vector<512x256xbf16>, vector<2x256xf32> -> vector<2x256xf32>
    %c0_42 = arith.constant 0 : index
    %c0_43 = arith.constant 0 : index
    %85 = vector.load %arg13[%c0_42, %c0_43] : memref<1x256xf32, #tpu.memory_space<vmem>>, vector<1x256xf32>
    %86 = vector.broadcast %85 : vector<1x256xf32> to vector<2x256xf32>
    %87 = arith.addf %84, %86 : vector<2x256xf32>
    %c0_44 = arith.constant 0 : index
    %c0_45 = arith.constant 0 : index
    %88 = vector.load %arg14[%c0_44, %c0_45] : memref<2x256xf32, #tpu.memory_space<vmem>>, vector<2x256xf32>
    tpu.vector_store %arg14[%c0_44, %c0_45], %87 {strides = array<i32>} : memref<2x256xf32, #tpu.memory_space<vmem>>, vector<2x256xf32>,
    return
  }
  func.func @transform_0(%arg0: i32) -> (i32, i32) {
    %c0_i32 = arith.constant 0 : i32
    %c0_i32_0 = arith.constant 0 : i32
    %c0_i32_1 = arith.constant 0 : i32
    return %c0_i32, %c0_i32_0 : i32, i32
  }
  func.func @transform_1(%arg0: i32) -> (i32, i32) {
    %c0_i32 = arith.constant 0 : i32
    %c0_i32_0 = arith.constant 0 : i32
    %c0_i32_1 = arith.constant 0 : i32
    return %c0_i32, %c0_i32_0 : i32, i32
  }
  func.func @transform_2(%arg0: i32) -> (i32, i32) {
    %c0_i32 = arith.constant 0 : i32
    %c0_i32_0 = arith.constant 0 : i32
    %c0_i32_1 = arith.constant 0 : i32
    return %c0_i32, %c0_i32_0 : i32, i32
  }
  func.func @transform_3(%arg0: i32) -> (i32, i32) {
    %c0_i32 = arith.constant 0 : i32
    %c0_i32_0 = arith.constant 0 : i32
    %c0_i32_1 = arith.constant 0 : i32
    return %c0_i32, %c0_i32_0 : i32, i32
  }
  func.func @transform_4(%arg0: i32) -> (i32, i32) {
    %c0_i32 = arith.constant 0 : i32
    %c0_i32_0 = arith.constant 0 : i32
    %c0_i32_1 = arith.constant 0 : i32
    return %c0_i32, %c0_i32_0 : i32, i32
  }
  func.func @transform_5(%arg0: i32) -> (i32, i32) {
    %c0_i32 = arith.constant 0 : i32
    %c0_i32_0 = arith.constant 0 : i32
    %c0_i32_1 = arith.constant 0 : i32
    return %c0_i32, %c0_i32_0 : i32, i32
  }
  func.func @transform_6(%arg0: i32) -> (i32, i32) {
    %c0_i32 = arith.constant 0 : i32
    %c0_i32_0 = arith.constant 0 : i32
    %c0_i32_1 = arith.constant 0 : i32
    return %c0_i32, %c0_i32_0 : i32, i32
  }
  func.func @transform_7(%arg0: i32) -> (i32, i32) {
    %c0_i32 = arith.constant 0 : i32
    %c0_i32_0 = arith.constant 0 : i32
    %c0_i32_1 = arith.constant 0 : i32
    return %c0_i32, %c0_i32_0 : i32, i32
  }
  func.func @transform_8(%arg0: i32) -> (i32, i32) {
    %c0_i32 = arith.constant 0 : i32
    %c0_i32_0 = arith.constant 0 : i32
    %c0_i32_1 = arith.constant 0 : i32
    return %c0_i32, %c0_i32_0 : i32, i32
  }
  func.func @transform_9(%arg0: i32) -> (i32, i32) {
    %c0_i32 = arith.constant 0 : i32
    %c0_i32_0 = arith.constant 0 : i32
    %c0_i32_1 = arith.constant 0 : i32
    return %c0_i32, %c0_i32_0 : i32, i32
  }
  func.func @transform_10(%arg0: i32) -> (i32, i32) {
    %c0_i32 = arith.constant 0 : i32
    %c0_i32_0 = arith.constant 0 : i32
    %c0_i32_1 = arith.constant 0 : i32
    return %c0_i32, %c0_i32_0 : i32, i32
  }
  func.func @transform_11(%arg0: i32) -> (i32, i32) {
    %c0_i32 = arith.constant 0 : i32
    %c0_i32_0 = arith.constant 0 : i32
    %c0_i32_1 = arith.constant 0 : i32
    return %c0_i32, %c0_i32_0 : i32, i32
  }
  func.func @transform_12(%arg0: i32) -> (i32, i32) {
    %c0_i32 = arith.constant 0 : i32
    %c0_i32_0 = arith.constant 0 : i32
    %c0_i32_1 = arith.constant 0 : i32
    return %c0_i32, %c0_i32_0 : i32, i32
  }
  func.func @transform_13(%arg0: i32) -> (i32, i32) {
    %c0_i32 = arith.constant 0 : i32
    %c0_i32_0 = arith.constant 0 : i32
    %c0_i32_1 = arith.constant 0 : i32
    return %c0_i32, %c0_i32_0 : i32, i32
  }
}

</mosaic_0001>

<bundles_post_ra>
// kernel: tpu_custom_call.1
= control target key start
LH: loop header
LB: loop body
LE: loop exit
PB: predicated region body
PF: predicated region fallthrough
CT: control target
= control target key end

     0   :  { %18 = vsyncpa [#allocation3], 0  ;;  %s3043_s0 = inlined_call_operand.hbm [shape: f32[2,768], index: 0, kind: input, shape index: {}]   ;;  %s3044_s1 = inlined_call_operand.hbm [shape: bf16[768,128], index: 1, kind: input, shape index: {}]   ;;  %s3045_s2 = inlined_call_operand.hbm [shape: f32[1,128], index: 2, kind: input, shape index: {}]   ;;  %s3046_s3 = inlined_call_operand.hbm [shape: bf16[128,256], index: 3, kind: input, shape index: {}]   ;;  %s3047_s4 = inlined_call_operand.hbm [shape: f32[1,256], index: 4, kind: input, shape index: {}]   ;;  %s3048_s5 = inlined_call_operand.hbm [shape: f32[1,256], index: 5, kind: input, shape index: {}]   ;;  %s3049_s6 = inlined_call_operand.hbm [shape: f32[1,256], index: 6, kind: input, shape index: {}]   ;;  %s3050_s7 = inlined_call_operand.hbm [shape: bf16[256,512], index: 7, kind: input, shape index: {}]   ;;  %s3051_s8 = inlined_call_operand.vmem [shape: f32[1,512], index: 8, kind: input, shape index: {}]   ;;  %s3052_s9 = inlined_call_operand.vmem [shape: f32[1,512], index: 9, kind: input, shape index: {}]   ;;  %s3053_s10 = inlined_call_operand.vmem [shape: f32[1,512], index: 10, kind: input, shape index: {}]   ;;  %s3054_s11 = inlined_call_operand.hbm [shape: bf16[512,256], index: 11, kind: input, shape index: {}]   ;;  %s3055_s12 = inlined_call_operand.vmem [shape: f32[1,256], index: 12, kind: input, shape index: {}]   ;;  %s3056_s13 = inlined_call_operand.hbm [shape: f32[2,256], index: 13, kind: output, shape index: {}]  }
   0x1   :  { %19 = vsyncpa [#allocation6], 0 }
   0x2   :  { %20 = vsyncpa [#allocation9], 0 }
   0x3   :  { %21 = vsyncpa [#allocation12], 0 }
   0x4   :  { %22 = vsyncpa [#allocation15], 0 }
   0x5   :  { %23 = vsyncpa [#allocation4], 0  ;;  %s2860_s25 = smov [#allocation5]  }
   0x6   :  { %s39_s26 = sshll.u32 %s2860_s25, 4  ;;  %s40_s26 = int_to_ptr.vmem [resolvable:$true] %s39_s26 }
   0x7   :  { %s2656_s27 = scalar_lea.vmem %s40_s26, 6144  ;;  %p2661_p1 = scmp.lt.s32.totalorder %s40_s26, %s40_s26 }
   0x8   :  { %p2657_p0 = scmp.ne.s32.totalorder %s40_s26, %s2656_s27  ;;  %p2662_p2 = scmp.lt.s32.totalorder %s2656_s27, %s2656_s27 }
   0xa   :  { %p2663_p3 = por %p2662_p2, %p2661_p1 }
   0xc   :  { %p2664_p4 = pnand %p2663_p3, %p2657_p0 }
   0xe   :  { %2667 = shalt.err (!%p2664_p4)
}
   0xf   :  { %s2861_s28 = smov 64   ;;  %s2862_s29 = smov 4  }
  0x10   :  { %45 = dma.hbm_to_vmem [thread:$0]  %s3044_s1, 6144, %s40_s26, [#allocation6], %s2861_s28, %s2861_s28, %s2862_s29  }
  0x11   :  { %s2863_s15 = smov [#allocation8]  }
  0x12   :  { %s61_s16 = sshll.u32 %s2863_s15, 4  ;;  %s62_s16 = int_to_ptr.vmem [resolvable:$true] %s61_s16 }
  0x13   :  { %s2676_s17 = scalar_lea.vmem %s62_s16, 2048  ;;  %p2681_p6 = scmp.lt.s32.totalorder %s62_s16, %s62_s16 }
  0x14   :  { %p2677_p5 = scmp.ne.s32.totalorder %s62_s16, %s2676_s17  ;;  %p2682_p7 = scmp.lt.s32.totalorder %s2676_s17, %s2676_s17 }
  0x16   :  { %p2683_p8 = por %p2682_p7, %p2681_p6 }
  0x18   :  { %p2684_p9 = pnand %p2683_p8, %p2677_p5 }
  0x1a   :  { %2687 = shalt.err (!%p2684_p9)
}
  0x1b   :  { %s2864_s18 = smov 128   ;;  %s2865_s19 = smov 8  }
  0x1c   :  { %67 = dma.hbm_to_vmem [thread:$0]  %s3046_s3, 2048, %s62_s16, [#allocation9], %s2864_s18, %s2864_s18, %s2865_s19  }
  0x1d   :  { %s2866_s1 = smov [#allocation11]   ;;  %s2867_s23 = smov [#allocation14]  }
  0x1e   :  { %s84_s22 = sshll.u32 %s2866_s1, 4  ;;  %s103_s24 = sshll.u32 %s2867_s23, 4  ;;  %s85_s22 = int_to_ptr.vmem [resolvable:$true] %s84_s22  ;;  %s104_s24 = int_to_ptr.vmem [resolvable:$true] %s103_s24 }
  0x1f   :  { %s2696_s25 = scalar_lea.vmem %s85_s22, 32  ;;  %p2701_p11 = scmp.lt.s32.totalorder %s85_s22, %s85_s22 }
  0x20   :  { %p2697_p10 = scmp.ne.s32.totalorder %s85_s22, %s2696_s25  ;;  %p2702_p12 = scmp.lt.s32.totalorder %s2696_s25, %s2696_s25 }
  0x22   :  { %p2703_p13 = por %p2702_p12, %p2701_p11 }
  0x24   :  { %p2704_p0 = pnand %p2703_p13, %p2697_p10 }
  0x26   :  { %2707 = shalt.err (!%p2704_p0)
}
  0x27   :  { %87 = dma.hbm_to_vmem [thread:$0]  %s3048_s5, 32, %s85_s22, [#allocation12]  }
  0x28   :  { %s2716_s28 = scalar_lea.vmem %s104_s24, 8192  ;;  %p2721_p2 = scmp.lt.s32.totalorder %s104_s24, %s104_s24 }
  0x29   :  { %p2717_p1 = scmp.ne.s32.totalorder %s104_s24, %s2716_s28  ;;  %p2722_p3 = scmp.lt.s32.totalorder %s2716_s28, %s2716_s28 }
  0x2b   :  { %p2723_p4 = por %p2722_p3, %p2721_p2 }
  0x2d   :  { %p2724_p5 = pnand %p2723_p4, %p2717_p1 }
  0x2f   :  { %2727 = shalt.err (!%p2724_p5)
}
  0x30   :  { %s2868_s3 = smov 256   ;;  %s2869_s29 = smov 16  }
  0x31   :  { %109 = dma.hbm_to_vmem [thread:$0]  %s3050_s7, 8192, %s104_s24, [#allocation15], %s2868_s3, %s2868_s3, %s2869_s29  }
  0x32   :  { %s2870_s15 = smov [#allocation2]   ;;  %s2871_s17 = smov [#allocation7]  }
  0x33   :  { %s30_s16 = sshll.u32 %s2870_s15, 4  ;;  %s52_s20 = sshll.u32 %s2871_s17, 4  ;;  %s31_s16 = int_to_ptr.vmem [resolvable:$true] %s30_s16  ;;  %s53_s20 = int_to_ptr.vmem [resolvable:$true] %s52_s20 }
  0x34   :  { %s2736_s5 = scalar_lea.vmem %s31_s16, 192  ;;  %p2741_p7 = scmp.lt.s32.totalorder %s31_s16, %s31_s16 }
  0x35   :  { %p2737_p6 = scmp.ne.s32.totalorder %s31_s16, %s2736_s5  ;;  %p2742_p8 = scmp.lt.s32.totalorder %s2736_s5, %s2736_s5 }
  0x37   :  { %p2743_p9 = por %p2742_p8, %p2741_p7 }
  0x39   :  { %p2744_p10 = pnand %p2743_p9, %p2737_p6 }
  0x3b   :  { %2747 = shalt.err (!%p2744_p10)
}
  0x3c   :  { %33 = dma.hbm_to_vmem [thread:$0]  %s3043_s0, 192, %s31_s16, [#allocation3]  }
  0x3d   :  { %s2756_s22 = scalar_lea.vmem %s53_s20, 16  ;;  %s2760_s7 = scalar_lea.vmem %s53_s20, 32 }
  0x3e   :  { %p2757_p11 = scmp.ne.s32.totalorder %s53_s20, %s2756_s22  ;;  %p2761_p12 = scmp.lt.s32.totalorder %s53_s20, %s53_s20 }
  0x3f   :  { %p2762_p13 = scmp.lt.s32.totalorder %s2760_s7, %s2756_s22 }
  0x41   :  { %p2763_p0 = por %p2762_p13, %p2761_p12 }
  0x43   :  { %p2764_p1 = pnand %p2763_p0, %p2757_p11 }
  0x45   :  { %2767 = shalt.err (!%p2764_p1)
}
  0x46   :  { %55 = dma.hbm_to_vmem [thread:$0]  %s3045_s2, 16, %s53_s20, [#allocation6]  }
  0x47   :  { %s2872_s25 = smov [#allocation10]   ;;  %s2873_s27 = smov [#allocation13]  }
  0x48   :  { %s74_s26 = sshll.u32 %s2872_s25, 4  ;;  %s94_s28 = sshll.u32 %s2873_s27, 4  ;;  %s75_s26 = int_to_ptr.vmem [resolvable:$true] %s74_s26  ;;  %s95_s28 = int_to_ptr.vmem [resolvable:$true] %s94_s28 }
  0x49   :  { %s2776_s3 = scalar_lea.vmem %s75_s26, 32  ;;  %p2781_p3 = scmp.lt.s32.totalorder %s75_s26, %s75_s26 }
  0x4a   :  { %p2777_p2 = scmp.ne.s32.totalorder %s75_s26, %s2776_s3  ;;  %p2782_p4 = scmp.lt.s32.totalorder %s2776_s3, %s2776_s3 }
  0x4c   :  { %p2783_p5 = por %p2782_p4, %p2781_p3 }
  0x4e   :  { %p2784_p6 = pnand %p2783_p5, %p2777_p2 }
  0x50   :  { %2787 = shalt.err (!%p2784_p6)
}
  0x51   :  { %77 = dma.hbm_to_vmem [thread:$0]  %s3047_s4, 32, %s75_s26, [#allocation9]  }
  0x52   :  { %s2796_s30 = scalar_lea.vmem %s95_s28, 32  ;;  %p2801_p8 = scmp.lt.s32.totalorder %s95_s28, %s95_s28 }
  0x53   :  { %p2797_p7 = scmp.ne.s32.totalorder %s95_s28, %s2796_s30  ;;  %p2802_p9 = scmp.lt.s32.totalorder %s2796_s30, %s2796_s30 }
  0x55   :  { %p2803_p10 = por %p2802_p9, %p2801_p8 }
  0x57   :  { %p2804_p11 = pnand %p2803_p10, %p2797_p7 }
  0x59   :  { %2807 = shalt.err (!%p2804_p11)
}
  0x5a   :  { %97 = dma.hbm_to_vmem [thread:$0]  %s3049_s6, 32, %s95_s28, [#allocation12]  }
  0x5b   :  { %s2874_s15 = smov [#allocation16]  }
  0x5c   :  { %s121_s16 = sshll.u32 %s2874_s15, 4  ;;  %s122_s16 = int_to_ptr.vmem [resolvable:$true] %s121_s16 }
  0x5d   :  { %s2816_s17 = scalar_lea.vmem %s122_s16, 8192  ;;  %p2821_p13 = scmp.lt.s32.totalorder %s122_s16, %s122_s16 }
  0x5e   :  { %p2817_p12 = scmp.ne.s32.totalorder %s122_s16, %s2816_s17  ;;  %p2822_p0 = scmp.lt.s32.totalorder %s2816_s17, %s2816_s17 }
  0x60   :  { %p2823_p1 = por %p2822_p0, %p2821_p13 }
  0x62   :  { %p2824_p2 = pnand %p2823_p1, %p2817_p12 }
  0x64   :  { %2827 = shalt.err (!%p2824_p2)
}
  0x65   :  { %127 = dma.hbm_to_vmem [thread:$0]  %s3054_s11, 8192, %s122_s16, [#allocation15], %s2864_s18, %s2864_s18, %s2865_s19  }
  0x66   :  { %2848 = dma.done.wait [#allocation3], 192  }
  0x67   :  { %2849 = vsyncadd [#allocation3], 4294967104 }
  0x68   :  { %2850 = dma.done.wait [#allocation6], 6160  }
  0x69   :  { %2851 = vsyncadd [#allocation6], 4294961136 }
  0x6a   :  { %2852 = dma.done.wait [#allocation9], 2080  }
  0x6b   :  { %2853 = vsyncadd [#allocation9], 4294965216 }
  0x6c   :  { %2854 = dma.done.wait [#allocation12], 64  }
  0x6d   :  { %2855 = vsyncadd [#allocation12], 4294967232 }
  0x6e   :  { %2856 = dma.done.wait [#allocation15], 16384  }
  0x6f   :  { %2857 = vsyncadd [#allocation15], 4294950912  ;;  %v2371_v0 = vld [vmem:[#allocation5 + $0x78] sm:$0xff]   ;;  %v2375_v4 = vld [vmem:[#allocation5 + $0x70] sm:$0xff]   ;;  %v2875_v21 = vmov 1983009808   ;;  %v166_v23 = vlaneseq }
  0x70   :  { %v2372_v1 = vld [vmem:[#allocation5 + $0x38] sm:$0xff]   ;;  %2287 = vmatprep.subr.bf16.mxu0 %v2371_v0  ;;  %v2376_v5 = vld [vmem:[#allocation5 + $0x30] sm:$0xff]   ;;  %v2379_v8 = vld [vmem:[#allocation5 + $0x68] sm:$0xff]   ;;  %v164_v22 = vunpack.c.l.s4 %v2875_v21  ;;  %vm863_vm1 = vcmask 1041408   ;;  %s2877_s21 = smov [#allocation17]  }
  0x71   :  { %v2373_v2 = vld [vmem:[#allocation5 + $0xf8] sm:$0xff]   ;;  %2288 = vmatpush3.bf16.msra.mxu0 %v2372_v1  ;;  %v2377_v6 = vld [vmem:[#allocation5 + $0xf0] sm:$0xff]   ;;  %v2380_v9 = vld [vmem:[#allocation5 + $0x28] sm:$0xff]   ;;  %v2981_v29 = vshrl.u32 %v166_v23, 7  ;;  %s2079_s1 = sshll.u32 %s2877_s21, 4  ;;  %s2080_s1 = int_to_ptr.vmem [resolvable:$true] %s2079_s1 }
  0x72   :  { %v2374_v3 = vld [vmem:[#allocation5 + $0xb8] sm:$0xff]   ;;  %2309 = vmatprep.subr.bf16.mxu1 %v2373_v2  ;;  %2289 = vmatprep.subr.bf16.mxu0 %v2375_v4  ;;  %v2378_v7 = vld [vmem:[#allocation5 + $0xb0] sm:$0xff]   ;;  %v2381_v10 = vld [vmem:[#allocation5 + $0xe8] sm:$0xff]   ;;  %v165_v28 = vunpack.c.0.s8 %v164_v22  ;;  %p2833_p4 = scmp.lt.s32.totalorder %s2080_s1, %s2080_s1 }
  0x73   :  { %2310 = vmatpush3.bf16.msra.mxu1 %v2374_v3  ;;  %v2382_v11 = vld [vmem:[#allocation5 + $0xa8] sm:$0xff]   ;;  %v2383_v12 = vld [vmem:[#allocation5 + $0x60] sm:$0xff]   ;;  %v2387_v16 = vld [vmem:[#allocation5 + $0x58] sm:$0xff]  }
  0x74   :  { %2311 = vmatprep.subr.bf16.mxu1 %v2377_v6  ;;  %v2384_v13 = vld [vmem:[#allocation5 + $0x20] sm:$0xff]   ;;  %v2388_v17 = vld [vmem:[#allocation5 + $0x18] sm:$0xff]   ;;  %v2391_v20 = vld [vmem:[#allocation5 + $0x50] sm:$0xff]   ;;  %v168_v34 = vsub.s32 %v165_v28, %v2981_v29 }
  0x75   :  { %2290 = vmatpush3.bf16.msra.mxu0 %v2376_v5  ;;  %v2385_v14 = vld [vmem:[#allocation5 + $0xe0] sm:$0xff]   ;;  %v2389_v18 = vld [vmem:[#allocation5 + $0xd8] sm:$0xff]   ;;  %v2392_v24 = vld [vmem:[#allocation5 + $0x10] sm:$0xff]  }
  0x76   :  { %2291 = vmatprep.subr.bf16.mxu0 %v2379_v8  ;;  %v2386_v15 = vld [vmem:[#allocation5 + $0xa0] sm:$0xff]   ;;  %v2390_v19 = vld [vmem:[#allocation5 + $0x98] sm:$0xff]   ;;  %v2393_v25 = vld [vmem:[#allocation5 + $0xd0] sm:$0xff]  }
  0x77   :  { %2312 = vmatpush3.bf16.msra.mxu1 %v2378_v7  ;;  %v2394_v26 = vld [vmem:[#allocation5 + $0x90] sm:$0xff]   ;;  %v2395_v27 = vld [vmem:[#allocation5 + $0x48] sm:$0xff]   ;;  %v2399_v33 = vld [vmem:[#allocation5 + $0x40] sm:$0xff]  }
  0x78   :  { %2313 = vmatprep.subr.bf16.mxu1 %v2381_v10  ;;  %v2396_v30 = vld [vmem:[#allocation5 + $0x8] sm:$0xff]   ;;  %v2400_v35 = vld [vmem:[#allocation5] sm:$0xff]   ;;  %v158_v37 = vld [vmem:[#allocation2] sm:$0xff] }
  0x79   :  { %2292 = vmatpush3.bf16.msra.mxu0 %v2380_v9  ;;  %v2397_v31 = vld [vmem:[#allocation5 + $0xc8] sm:$0xff]   ;;  %v2401_v36 = vld [vmem:[#allocation5 + $0xc0] sm:$0xff]   ;;  %v169_v38 = vrot.slane %v158_v37, %v168_v34  ;;  %v162_v40 = vcombine.high %v158_v37, %v158_v37  ;;  %v2403_v41 = vld [vmem:[#allocation5 + $0x178] sm:$0xff]  }
  0x7a   :  { %2293 = vmatprep.subr.bf16.mxu0 %v2383_v12  ;;  %v2398_v32 = vld [vmem:[#allocation5 + $0x88] sm:$0xff]   ;;  %v2402_v39 = vld [vmem:[#allocation5 + $0x80] sm:$0xff]   ;;  %v2405_v47 = vld [vmem:[#allocation5 + $0x138] sm:$0xff]  }
  0x7b   :  { %2314 = vmatpush3.bf16.msra.mxu1 %v2382_v11  ;;  %v177_v42 = vcombine.high %v169_v38, %v169_v38  ;;  %v176_v43 = vrot.slane %v162_v40, %v168_v34  ;;  %v193_v44 = vpack.c.bf16 %v169_v38, %v169_v38  ;;  %v2406_v49 = vld [vmem:[#allocation5 + $0x170] sm:$0xff]   ;;  %v2408_v52 = vld [vmem:[#allocation5 + $0x168] sm:$0xff]   ;;  %v2410_v54 = vld [vmem:[#allocation5 + $0x160] sm:$0xff]  }
  0x7c   :  { %2315 = vmatprep.subr.bf16.mxu1 %v2385_v14  ;;  %v2407_v51 = vld [vmem:[#allocation5 + $0x130] sm:$0xff]   ;;  %v2409_v53 = vld [vmem:[#allocation5 + $0x128] sm:$0xff]   ;;  %v2411_v55 = vld [vmem:[#allocation5 + $0x120] sm:$0xff]  }
  0x7d   :  { %2294 = vmatpush3.bf16.msra.mxu0 %v2384_v13  ;;  %v194_v45 = vpack.c.bf16 %v177_v42, %v177_v42  ;;  %v178_v46 = vcombine.high %v176_v43, %v176_v43  ;;  %v195_v48 = vpack.c.bf16 %v176_v43, %v176_v43  ;;  %v2412_v56 = vld [vmem:[#allocation5 + $0x158] sm:$0xff]   ;;  %v2414_v60 = vld [vmem:[#allocation5 + $0x150] sm:$0xff]   ;;  %v2416_v63 = vld [vmem:[#allocation5 + $0x148] sm:$0xff]  }
  0x7e   :  { %2295 = vmatprep.subr.bf16.mxu0 %v2387_v16  ;;  %v2092_v57 = vld.sshfl [vmem:[#allocation2 + $0x8] sm:$0x33 pattern:$0x76325410]  ;;  %v2415_v62 = vld [vmem:[#allocation5 + $0x110] sm:$0xff]   ;;  %v2417_v0 = vld [vmem:[#allocation5 + $0x108] sm:$0xff]  }
  0x7f   :  { %2316 = vmatpush3.bf16.msra.mxu1 %v2386_v15  ;;  %622 = vmatprep.mubr.bf16.mxu0 %v194_v45  ;;  %v196_v50 = vpack.c.bf16 %v178_v46, %v178_v46  ;;  %v186_v58 = vcombine.high %v2092_v57, %v2092_v57  ;;  %v2413_v59 = vld [vmem:[#allocation5 + $0x118] sm:$0xff]   ;;  %v2418_v1 = vld [vmem:[#allocation5 + $0x140] sm:$0xff]   ;;  %v197_v3 = vpack.c.bf16 %v2092_v57, %v2092_v57 }
  0x80   :  { %2317 = vmatprep.subr.bf16.mxu1 %v2389_v18  ;;  %v2419_v2 = vld [vmem:[#allocation5 + $0x100] sm:$0xff]   ;;  %v2420_v4 = vld [vmem:[#allocation8 + $0x70] ss:$8 sps:$4 sm:$0xff]  }
  0x81   :  { %2296 = vmatpush3.bf16.msra.mxu0 %v2388_v17  ;;  %662 = vmatprep.mubr.bf16.mxu1 %v196_v50  ;;  %v198_v61 = vpack.c.bf16 %v186_v58, %v186_v58  ;;  %v2422_v5 = vld [vmem:[#allocation8 + $0x74] ss:$8 sps:$4 sm:$0xff]   ;;  %v2425_v6 = vld [vmem:[#allocation8 + $0x64] ss:$8 sps:$4 sm:$0xff]   ;;  %v2423_v7 = vld [vmem:[#allocation8 + $0x60] ss:$8 sps:$4 sm:$0xff]  }
  0x82   :  { %2297 = vmatprep.subr.bf16.mxu0 %v2391_v20  ;;  %v2428_v8 = vld [vmem:[#allocation8 + $0x54] ss:$8 sps:$4 sm:$0xff]   ;;  %v2426_v9 = vld [vmem:[#allocation8 + $0x50] ss:$8 sps:$4 sm:$0xff]   ;;  %v2431_v10 = vld [vmem:[#allocation8 + $0x44] ss:$8 sps:$4 sm:$0xff]  }
  0x83   :  { %2318 = vmatpush3.bf16.msra.mxu1 %v2390_v19  ;;  %v2429_v11 = vld [vmem:[#allocation8 + $0x40] ss:$8 sps:$4 sm:$0xff]   ;;  %v2434_v12 = vld [vmem:[#allocation8 + $0x34] ss:$8 sps:$4 sm:$0xff]   ;;  %v2432_v13 = vld [vmem:[#allocation8 + $0x30] ss:$8 sps:$4 sm:$0xff]  }
  0x84   :  { %2319 = vmatprep.subr.bf16.mxu1 %v2393_v25  ;;  %v2437_v14 = vld [vmem:[#allocation8 + $0x24] ss:$8 sps:$4 sm:$0xff]   ;;  %v2435_v15 = vld [vmem:[#allocation8 + $0x20] ss:$8 sps:$4 sm:$0xff]   ;;  %v2440_v16 = vld [vmem:[#allocation8 + $0x14] ss:$8 sps:$4 sm:$0xff]  }
  0x85   :  { %2298 = vmatpush3.bf16.msra.mxu0 %v2392_v24  ;;  %v2438_v17 = vld [vmem:[#allocation8 + $0x10] ss:$8 sps:$4 sm:$0xff]   ;;  %v2443_v18 = vld [vmem:[#allocation8 + $0x4] ss:$8 sps:$4 sm:$0xff]   ;;  %v2441_v19 = vld [vmem:[#allocation8] ss:$8 sps:$4 sm:$0xff]  }
  0x86   :  { %2299 = vmatprep.subr.bf16.mxu0 %v2395_v27  ;;  %v2876_v20 = vmov 0   ;;  %v2449_v45 = vld [vmem:[#allocation14 + $0xec] ss:$16 sps:$4 sm:$0xff]   ;;  %v2444_v46 = vld [vmem:[#allocation14 + $0xe0] ss:$16 sps:$4 sm:$0xff]  }
  0x87   :  { %2320 = vmatpush3.bf16.msra.mxu1 %v2394_v26  ;;  %v2450_v50 = vld [vmem:[#allocation14 + $0xc0] ss:$16 sps:$4 sm:$0xff]   ;;  %v2467_v57 = vld [vmem:[#allocation14 + $0x8c] ss:$16 sps:$4 sm:$0xff]  }
  0x88   :  { %2321 = vmatprep.subr.bf16.mxu1 %v2397_v31  ;;  %v2093_v31 = vld [vmem:[#allocation7] ss:$0 sm:$0xff]  ;;  %v2462_v58 = vld [vmem:[#allocation14 + $0x80] ss:$16 sps:$4 sm:$0xff]  }
  0x89   :  { %2300 = vmatpush3.bf16.msra.mxu0 %v2396_v30 }
  0x8a   :  { %2301 = vmatprep.subr.bf16.mxu0 %v2399_v33 }
  0x8b   :  { %2322 = vmatpush3.bf16.msra.mxu1 %v2398_v32 }
  0x8c   :  { %2323 = vmatprep.subr.bf16.mxu1 %v2401_v36 }
  0x8d   :  { %2302 = vmatpush3.bf16.msra.mxu0 %v2400_v35 }
  0x8e   :  { %2331 = vmatprep.subr.bf16.mxu0 %v2403_v41 }
  0x8f   :  { %2324 = vmatpush3.bf16.msra.mxu1 %v2402_v39 }
  0x90   :  { %623 = vmatmul.mubr.bf16.vlgmr.msra.gmra.mxu0 %v193_v44  ;;  %822 = vmatprep.subr.bf16.mxu1 %v2422_v5  ;;  %v2446_v44 = vld [vmem:[#allocation14 + $0xe4] ss:$16 sps:$4 sm:$0xff]   ;;  %v2485_v5 = vld [vmem:[#allocation14 + $0x2c] ss:$16 sps:$4 sm:$0xff]  }
  0x91   :  { %2332 = vmatpush3.bf16.msra.mxu0 %v2405_v47  ;;  %702 = vmatprep.mubr.bf16.mxu0 %v198_v61  ;;  %v2447_v47 = vld [vmem:[#allocation14 + $0xe8] ss:$16 sps:$4 sm:$0xff]   ;;  %v2473_v61 = vld [vmem:[#allocation14 + $0x6c] ss:$16 sps:$4 sm:$0xff]  }
  0x92   :  { %663 = vmatmul.mubr.bf16.vlgmr.msra.gmra.mxu1 %v195_v48  ;;  %2333 = vmatprep.subr.bf16.mxu0 %v2406_v49  ;;  %v2452_v48 = vld [vmem:[#allocation14 + $0xc4] ss:$16 sps:$4 sm:$0xff]   ;;  %v2455_v49 = vld [vmem:[#allocation14 + $0xcc] ss:$16 sps:$4 sm:$0xff]  }
  0x93   :  { %823 = vmatpush1.bf16.msra.mxu1 %v2420_v4  ;;  %854 = vmatprep.mubr.bf16.mxu1 %v2876_v20  ;;  %v2482_v4 = vld [vmem:[#allocation14 + $0x24] ss:$16 sps:$4 sm:$0xff]  }
  0x94   :  { %824 = vmatprep.subr.bf16.mxu1 %v2425_v6  ;;  %v2480_v6 = vld [vmem:[#allocation14 + $0x20] ss:$16 sps:$4 sm:$0xff]   ;;  %v2506_v20 = vld [vmem:[#allocation14 + $0x1a4] ss:$16 sps:$4 sm:$0xff]  }
  0x95   :  { %2334 = vmatpush3.bf16.msra.mxu0 %v2407_v51  ;;  %v2453_v51 = vld [vmem:[#allocation14 + $0xc8] ss:$16 sps:$4 sm:$0xff]  }
  0x96   :  { %2335 = vmatprep.subr.bf16.mxu0 %v2408_v52  ;;  %v2458_v52 = vld [vmem:[#allocation14 + $0xa4] ss:$16 sps:$4 sm:$0xff]  }
  0x97   :  { %825 = vmatpush1.bf16.msra.mxu1 %v2423_v7  ;;  %v2483_v7 = vld [vmem:[#allocation14 + $0x28] ss:$16 sps:$4 sm:$0xff]  }
  0x98   :  { %826 = vmatprep.subr.bf16.mxu1 %v2428_v8  ;;  %v2488_v8 = vld [vmem:[#allocation14 + $0x4] ss:$16 sps:$4 sm:$0xff]  }
  0x99   :  { %2336 = vmatpush3.bf16.msra.mxu0 %v2409_v53  ;;  %v2461_v53 = vld [vmem:[#allocation14 + $0xac] ss:$16 sps:$4 sm:$0xff]  }
  0x9a   :  { %2337 = vmatprep.subr.bf16.mxu0 %v2410_v54  ;;  %v2456_v54 = vld [vmem:[#allocation14 + $0xa0] ss:$16 sps:$4 sm:$0xff]  }
  0x9b   :  { %827 = vmatpush1.bf16.msra.mxu1 %v2426_v9  ;;  %v2491_v9 = vld [vmem:[#allocation14 + $0xc] ss:$16 sps:$4 sm:$0xff]  }
  0x9c   :  { %828 = vmatprep.subr.bf16.mxu1 %v2431_v10  ;;  %v2486_v10 = vld [vmem:[#allocation14] ss:$16 sps:$4 sm:$0xff]  }
  0x9d   :  { %2338 = vmatpush3.bf16.msra.mxu0 %v2411_v55  ;;  %v2459_v55 = vld [vmem:[#allocation14 + $0xa8] ss:$16 sps:$4 sm:$0xff]  }
  0x9e   :  { %2339 = vmatprep.subr.bf16.mxu0 %v2412_v56  ;;  %v2464_v56 = vld [vmem:[#allocation14 + $0x84] ss:$16 sps:$4 sm:$0xff]  }
  0x9f   :  { %829 = vmatpush1.bf16.msra.mxu1 %v2429_v11  ;;  %v2489_v11 = vld [vmem:[#allocation14 + $0x8] ss:$16 sps:$4 sm:$0xff]  }
  0xa0   :  { %830 = vmatprep.subr.bf16.mxu1 %v2434_v12  ;;  %v2494_v12 = vld [vmem:[#allocation14 + $0x1e4] ss:$16 sps:$4 sm:$0xff]  }
  0xa1   :  { %2340 = vmatpush3.bf16.msra.mxu0 %v2413_v59  ;;  %v2465_v59 = vld [vmem:[#allocation14 + $0x88] ss:$16 sps:$4 sm:$0xff]  }
  0xa2   :  { %2341 = vmatprep.subr.bf16.mxu0 %v2414_v60  ;;  %v2470_v60 = vld [vmem:[#allocation14 + $0x64] ss:$16 sps:$4 sm:$0xff]  }
  0xa3   :  { %831 = vmatpush1.bf16.msra.mxu1 %v2432_v13  ;;  %v2497_v13 = vld [vmem:[#allocation14 + $0x1ec] ss:$16 sps:$4 sm:$0xff]  }
  0xa4   :  { %832 = vmatprep.subr.bf16.mxu1 %v2437_v14  ;;  %v2492_v14 = vld [vmem:[#allocation14 + $0x1e0] ss:$16 sps:$4 sm:$0xff]  }
  0xa5   :  { %2342 = vmatpush3.bf16.msra.mxu0 %v2415_v62  ;;  %v2468_v62 = vld [vmem:[#allocation14 + $0x60] ss:$16 sps:$4 sm:$0xff]  }
  0xa6   :  { %2343 = vmatprep.subr.bf16.mxu0 %v2416_v63  ;;  %v2471_v63 = vld [vmem:[#allocation14 + $0x68] ss:$16 sps:$4 sm:$0xff]  }
  0xa7   :  { %833 = vmatpush1.bf16.msra.mxu1 %v2435_v15  ;;  %v2495_v15 = vld [vmem:[#allocation14 + $0x1e8] ss:$16 sps:$4 sm:$0xff]  }
  0xa8   :  { %834 = vmatprep.subr.bf16.mxu1 %v2440_v16  ;;  %v2500_v16 = vld [vmem:[#allocation14 + $0x1c4] ss:$16 sps:$4 sm:$0xff]  }
  0xa9   :  { %2344 = vmatpush3.bf16.msra.mxu0 %v2417_v0  ;;  %v2476_v0 = vld [vmem:[#allocation14 + $0x44] ss:$16 sps:$4 sm:$0xff]  }
  0xaa   :  { %2345 = vmatprep.subr.bf16.mxu0 %v2418_v1  ;;  %v2479_v1 = vld [vmem:[#allocation14 + $0x4c] ss:$16 sps:$4 sm:$0xff]  }
  0xab   :  { %835 = vmatpush1.bf16.msra.mxu1 %v2438_v17  ;;  %v2503_v17 = vld [vmem:[#allocation14 + $0x1cc] ss:$16 sps:$4 sm:$0xff]  }
  0xac   :  { %836 = vmatprep.subr.bf16.mxu1 %v2443_v18  ;;  %v2498_v18 = vld [vmem:[#allocation14 + $0x1c0] ss:$16 sps:$4 sm:$0xff]  }
  0xad   :  { %2346 = vmatpush3.bf16.msra.mxu0 %v2419_v2  ;;  %v2474_v2 = vld [vmem:[#allocation14 + $0x40] ss:$16 sps:$4 sm:$0xff]  }
  0xae   :  { %1349 = vmatprep.subr.bf16.mxu0 %v2446_v44  ;;  %v2539_v44 = vld [vmem:[#allocation14 + $0x10c] ss:$16 sps:$4 sm:$0xff]  }
  0xaf   :  { %837 = vmatpush1.bf16.msra.mxu1 %v2441_v19  ;;  %v2501_v19 = vld [vmem:[#allocation14 + $0x1c8] ss:$16 sps:$4 sm:$0xff]  }
  0xb0   :  { %703 = vmatmul.mubr.bf16.vlgmr.msra.gmra.mxu0 %v197_v3  ;;  %1390 = vmatprep.subr.bf16.mxu1 %v2449_v45  ;;  %v2477_v3 = vld [vmem:[#allocation14 + $0x48] ss:$16 sps:$4 sm:$0xff]   ;;  %v2985_v45 = vsub.s32 0, %v2981_v29 }
  0xb1   :  { %1350 = vmatpush1.bf16.msra.mxu0 %v2444_v46  ;;  %v730_v46 = vld [vmem:[#allocation10] sm:$0x3] }
  0xb2   :  { %1351 = vmatprep.subr.bf16.mxu0 %v2452_v48  ;;  %v735_v48 = vrot.slane %v730_v46, %v2985_v45 }
  0xb5   :  { %1352 = vmatpush1.bf16.msra.mxu0 %v2450_v50 }
  0xb6   :  { %1353 = vmatprep.subr.bf16.mxu0 %v2458_v52 }
  0xb9   :  { %1354 = vmatpush1.bf16.msra.mxu0 %v2456_v54 }
  0xba   :  { %1355 = vmatprep.subr.bf16.mxu0 %v2464_v56 }
  0xbd   :  { %1356 = vmatpush1.bf16.msra.mxu0 %v2462_v58 }
  0xbe   :  { %1357 = vmatprep.subr.bf16.mxu0 %v2470_v60 }
  0xc1   :  { %1358 = vmatpush1.bf16.msra.mxu0 %v2468_v62 }
  0xc2   :  { %1359 = vmatprep.subr.bf16.mxu0 %v2476_v0 }
  0xc5   :  { %1360 = vmatpush1.bf16.msra.mxu0 %v2474_v2 }
  0xc6   :  { %1361 = vmatprep.subr.bf16.mxu0 %v2482_v4 }
  0xc9   :  { %1362 = vmatpush1.bf16.msra.mxu0 %v2480_v6 }
  0xca   :  { %1363 = vmatprep.subr.bf16.mxu0 %v2488_v8 }
  0xcd   :  { %1364 = vmatpush1.bf16.msra.mxu0 %v2486_v10 }
  0xce   :  { %1365 = vmatprep.subr.bf16.mxu0 %v2494_v12 }
  0xd1   :  { %1366 = vmatpush2.bf16.msra.mxu0 %v2492_v14 }
  0xd2   :  { %1367 = vmatprep.subr.bf16.mxu0 %v2500_v16 }
  0xd5   :  { %1368 = vmatpush2.bf16.msra.mxu0 %v2498_v18 }
  0xd6   :  { %1369 = vmatprep.subr.bf16.mxu0 %v2506_v20 }
 0x150   :  { %v2303_v21 = vpop.f32.mrf.mxu0 }
 0x152   :  { %v2304_v22 = vpop.f32.mrf.mxu0  ;;  %v2325_v23 = vpop.f32.mrf.mxu1 }
 0x153   :  { %v2305_v30 = vadd.f32 %v2304_v22, %v2303_v21  ;;  %v2509_v21 = vld [vmem:[#allocation14 + $0x1ac] ss:$16 sps:$4 sm:$0xff]   ;;  %v2504_v22 = vld [vmem:[#allocation14 + $0x1a0] ss:$16 sps:$4 sm:$0xff]  }
 0x154   :  { %v2306_v24 = vpop.f32.mrf.mxu0  ;;  %v2326_v25 = vpop.f32.mrf.mxu1  ;;  %1370 = vmatpush2.bf16.msra.mxu0 %v2504_v22 }
 0x155   :  { %v625_v32 = vadd.f32 %v2305_v30, %v2093_v31  ;;  %v2327_v33 = vadd.f32 %v2326_v25, %v2325_v23  ;;  %v2507_v23 = vld [vmem:[#allocation14 + $0x1a8] ss:$16 sps:$4 sm:$0xff]   ;;  %v2512_v24 = vld [vmem:[#allocation14 + $0x184] ss:$16 sps:$4 sm:$0xff]   ;;  %v2515_v25 = vld [vmem:[#allocation14 + $0x18c] ss:$16 sps:$4 sm:$0xff]  }
 0x156   :  { %v2307_v26 = vpop.f32.mrf.mxu0  ;;  %v2328_v27 = vpop.f32.mrf.mxu1  ;;  %1371 = vmatprep.subr.bf16.mxu0 %v2512_v24  ;;  %v2521_v30 = vld [vmem:[#allocation14 + $0x16c] ss:$16 sps:$4 sm:$0xff]   ;;  %v2516_v31 = vld [vmem:[#allocation14 + $0x160] ss:$16 sps:$4 sm:$0xff]  }
 0x157   :  { %v665_v36 = vadd.f32 %v2327_v33, %v625_v32  ;;  %v2510_v26 = vld [vmem:[#allocation14 + $0x180] ss:$16 sps:$4 sm:$0xff]   ;;  %v2513_v27 = vld [vmem:[#allocation14 + $0x188] ss:$16 sps:$4 sm:$0xff]   ;;  %v2524_v33 = vld [vmem:[#allocation14 + $0x144] ss:$16 sps:$4 sm:$0xff]  }
 0x158   :  { %v2329_v28 = vpop.f32.mrf.mxu1  ;;  %1372 = vmatpush2.bf16.msra.mxu0 %v2510_v26  ;;  %v2519_v32 = vld [vmem:[#allocation14 + $0x168] ss:$16 sps:$4 sm:$0xff]  }
 0x159   :  { %v2518_v28 = vld [vmem:[#allocation14 + $0x164] ss:$16 sps:$4 sm:$0xff]  }
 0x15a   :  { %1373 = vmatprep.subr.bf16.mxu0 %v2518_v28 }
 0x15c   :  { %1374 = vmatpush2.bf16.msra.mxu0 %v2516_v31  ;;  %v907_v31 = vld [vmem:[#allocation11] sm:$0x3] }
 0x15d   :  { %1375 = vmatprep.subr.bf16.mxu0 %v2524_v33  ;;  %v912_v33 = vrot.slane %v907_v31, %v2985_v45 }
 0x170   :  { %v2347_v34 = vpop.f32.mrf.mxu0 }
 0x172   :  { %v2348_v35 = vpop.f32.mrf.mxu0 }
 0x173   :  { %v2349_v37 = vadd.f32 %v2348_v35, %v2347_v34  ;;  %v2527_v34 = vld [vmem:[#allocation14 + $0x14c] ss:$16 sps:$4 sm:$0xff]   ;;  %v2522_v35 = vld [vmem:[#allocation14 + $0x140] ss:$16 sps:$4 sm:$0xff]  }
 0x174   :  { %v2350_v38 = vpop.f32.mrf.mxu0  ;;  %1376 = vmatpush2.bf16.msra.mxu0 %v2522_v35 }
 0x175   :  { %v705_v39 = vadd.f32 %v2349_v37, %v665_v36  ;;  %v2525_v36 = vld [vmem:[#allocation14 + $0x148] ss:$16 sps:$4 sm:$0xff]   ;;  %v2530_v37 = vld [vmem:[#allocation14 + $0x124] ss:$16 sps:$4 sm:$0xff]   ;;  %v2533_v38 = vld [vmem:[#allocation14 + $0x12c] ss:$16 sps:$4 sm:$0xff]  }
 0x176   :  { %v2351_v40 = vpop.f32.mrf.mxu0  ;;  %1377 = vmatprep.subr.bf16.mxu0 %v2530_v37 }
 0x177   :  { %vm710_vm0 = vcmp.gt.f32.partialorder %v705_v39, 0.0  ;;  %v711_v41 = vmul.f32 0.2, %v705_v39  ;;  %v2531_v40 = vld [vmem:[#allocation14 + $0x128] ss:$16 sps:$4 sm:$0xff]  }
 0x179   :  { %v712_v42 = vsel %vm710_vm0, %v705_v39, %v711_v41  ;;  %v2528_v39 = vld [vmem:[#allocation14 + $0x120] ss:$16 sps:$4 sm:$0xff]   ;;  %v2536_v41 = vld [vmem:[#allocation14 + $0x104] ss:$16 sps:$4 sm:$0xff]  }
 0x17a   :  { %v713_v43 = vpack.c.bf16 %v712_v42, %v712_v42  ;;  %1378 = vmatpush2.bf16.msra.mxu0 %v2528_v39  ;;  %v2534_v42 = vld [vmem:[#allocation14 + $0x100] ss:$16 sps:$4 sm:$0xff]  }
 0x17b   :  { %1379 = vmatprep.subr.bf16.mxu0 %v2536_v41 }
 0x17c   :  { %855 = vmatmul.mubr.bf16.vlgmr.msra.gmra.mxu1 %v713_v43  ;;  %v2537_v43 = vld [vmem:[#allocation14 + $0x108] ss:$16 sps:$4 sm:$0xff]  }
 0x17d   :  { %1391 = vmatpush1.bf16.msra.mxu1 %v2447_v47  ;;  %v2988_v47 = vsub.s32 1, %v2981_v29 }
 0x17e   :  { %1392 = vmatprep.subr.bf16.mxu1 %v2455_v49  ;;  %1380 = vmatpush2.bf16.msra.mxu0 %v2534_v42 }
 0x17f   :  { %v739_v49 = vrot.slane %v730_v46, %v2988_v47  ;;  %v916_v37 = vrot.slane %v907_v31, %v2988_v47  ;;  %v2605_v31 = vld [vmem:[#allocation16 + $0x1d4] ss:$8 sps:$4 sm:$0xff]  }
 0x181   :  { %1393 = vmatpush1.bf16.msra.mxu1 %v2453_v51 }
 0x182   :  { %1394 = vmatprep.subr.bf16.mxu1 %v2461_v53 }
 0x185   :  { %1395 = vmatpush1.bf16.msra.mxu1 %v2459_v55 }
 0x186   :  { %1396 = vmatprep.subr.bf16.mxu1 %v2467_v57 }
 0x189   :  { %1397 = vmatpush1.bf16.msra.mxu1 %v2465_v59 }
 0x18a   :  { %1398 = vmatprep.subr.bf16.mxu1 %v2473_v61 }
 0x18d   :  { %1399 = vmatpush1.bf16.msra.mxu1 %v2471_v63 }
 0x18e   :  { %1400 = vmatprep.subr.bf16.mxu1 %v2479_v1 }
 0x191   :  { %1401 = vmatpush1.bf16.msra.mxu1 %v2477_v3 }
 0x192   :  { %1402 = vmatprep.subr.bf16.mxu1 %v2485_v5 }
 0x195   :  { %1403 = vmatpush1.bf16.msra.mxu1 %v2483_v7 }
 0x196   :  { %1404 = vmatprep.subr.bf16.mxu1 %v2491_v9 }
 0x199   :  { %1405 = vmatpush1.bf16.msra.mxu1 %v2489_v11 }
 0x19a   :  { %1406 = vmatprep.subr.bf16.mxu1 %v2497_v13 }
 0x19d   :  { %1407 = vmatpush2.bf16.msra.mxu1 %v2495_v15 }
 0x19e   :  { %1408 = vmatprep.subr.bf16.mxu1 %v2503_v17 }
 0x1a1   :  { %1409 = vmatpush2.bf16.msra.mxu1 %v2501_v19 }
 0x1a2   :  { %1410 = vmatprep.subr.bf16.mxu1 %v2509_v21 }
 0x1a5   :  { %1411 = vmatpush2.bf16.msra.mxu1 %v2507_v23 }
 0x1a6   :  { %1412 = vmatprep.subr.bf16.mxu1 %v2515_v25 }
 0x1a9   :  { %1413 = vmatpush2.bf16.msra.mxu1 %v2513_v27 }
 0x1aa   :  { %1414 = vmatprep.subr.bf16.mxu1 %v2521_v30 }
 0x1ad   :  { %1415 = vmatpush2.bf16.msra.mxu1 %v2519_v32  ;;  %v921_v32 = vld [vmem:[#allocation13] sm:$0x3] }
 0x1ae   :  { %1416 = vmatprep.subr.bf16.mxu1 %v2527_v34  ;;  %v930_v41 = vrot.slane %v921_v32, %v2988_v47 }
 0x1b1   :  { %1417 = vmatpush2.bf16.msra.mxu1 %v2525_v36  ;;  %v926_v36 = vrot.slane %v921_v32, %v2985_v45  ;;  %v2600_v32 = vld [vmem:[#allocation16 + $0xd0] ss:$8 sps:$4 sm:$0xff]  }
 0x1b2   :  { %1418 = vmatprep.subr.bf16.mxu1 %v2533_v38 }
 0x1b5   :  { %1419 = vmatpush2.bf16.msra.mxu1 %v2531_v40 }
 0x1b6   :  { %1420 = vmatprep.subr.bf16.mxu1 %v2539_v44 }
 0x1b9   :  { %1421 = vmatpush2.bf16.msra.mxu1 %v2537_v43 }
 0x23c   :  { %v856_v50 = vpop.f32.mrf.mxu1 }
 0x23d   :  { %v857_v51 = vadd.f32 %v856_v50, %v735_v48 }
 0x23e   :  { %v858_v52 = vpop.f32.mrf.mxu1 }
 0x23f   :  { %v864_v53 = vsel %vm863_vm1, %v857_v51, 0.0  ;;  %v859_v54 = vadd.f32 %v858_v52, %v739_v49 }
 0x240   :  { %v865_v55 = vrot.slane %v864_v53, 4  ;;  %v860_v56 = vpop.f32.mrf.mxu1 }
 0x241   :  { %v871_v57 = vsel %vm863_vm1, %v859_v54, 0.0  ;;  %v2543_v56 = vld [vmem:[#allocation16 + $0x170] ss:$8 sps:$4 sm:$0xff]  }
 0x242   :  { %v866_v58 = vadd.f32 %v865_v55, %v864_v53  ;;  %v872_v59 = vrot.slane %v871_v57, 4  ;;  %v861_v60 = vpop.f32.mrf.mxu1  ;;  %v2542_v53 = vld [vmem:[#allocation16 + $0x74] ss:$8 sps:$4 sm:$0xff]   ;;  %v2540_v55 = vld [vmem:[#allocation16 + $0x70] ss:$8 sps:$4 sm:$0xff]  }
 0x243   :  { %1979 = vmatprep.subr.bf16.mxu0 %v2542_v53  ;;  %v2549_v60 = vld [vmem:[#allocation16 + $0x160] ss:$8 sps:$4 sm:$0xff]  }
 0x244   :  { %v867_v61 = vrot.slane %v866_v58, 2  ;;  %v873_v62 = vadd.f32 %v872_v59, %v871_v57  ;;  %v2548_v57 = vld [vmem:[#allocation16 + $0x64] ss:$8 sps:$4 sm:$0xff]   ;;  %v2546_v59 = vld [vmem:[#allocation16 + $0x60] ss:$8 sps:$4 sm:$0xff]  }
 0x245   :  { %v2630_v53 = vld [vmem:[#allocation16 + $0x80] ss:$8 sps:$4 sm:$0xff]  }
 0x246   :  { %v868_v63 = vadd.f32 %v867_v61, %v866_v58  ;;  %v874_v0 = vrot.slane %v873_v62, 2  ;;  %v2551_v58 = vld [vmem:[#allocation16 + $0x164] ss:$8 sps:$4 sm:$0xff]   ;;  %v2554_v61 = vld [vmem:[#allocation16 + $0x54] ss:$8 sps:$4 sm:$0xff]  }
 0x248   :  { %v869_v1 = vrot.slane %v868_v63, 1  ;;  %v875_v2 = vadd.f32 %v874_v0, %v873_v62  ;;  %v2557_v62 = vld [vmem:[#allocation16 + $0x154] ss:$8 sps:$4 sm:$0xff]   ;;  %v2555_v0 = vld [vmem:[#allocation16 + $0x150] ss:$8 sps:$4 sm:$0xff]  }
 0x24a   :  { %v870_v3 = vadd.f32 %v869_v1, %v868_v63  ;;  %v876_v4 = vrot.slane %v875_v2, 1  ;;  %v2552_v63 = vld [vmem:[#allocation16 + $0x50] ss:$8 sps:$4 sm:$0xff]   ;;  %v2560_v1 = vld [vmem:[#allocation16 + $0x44] ss:$8 sps:$4 sm:$0xff]  }
 0x24c   :  { %v879_v5 = vmul.f32 0.5, %v870_v3  ;;  %v877_v6 = vadd.f32 %v876_v4, %v875_v2  ;;  %v2563_v2 = vld [vmem:[#allocation16 + $0x144] ss:$8 sps:$4 sm:$0xff]   ;;  %v2558_v3 = vld [vmem:[#allocation16 + $0x40] ss:$8 sps:$4 sm:$0xff]  }
 0x24d   :  { %v2561_v4 = vld [vmem:[#allocation16 + $0x140] ss:$8 sps:$4 sm:$0xff]  }
 0x24e   :  { %v881_v7 = vsub.f32 %v857_v51, %v879_v5  ;;  %v880_v8 = vmul.f32 0.5, %v877_v6  ;;  %v2566_v5 = vld [vmem:[#allocation16 + $0x34] ss:$8 sps:$4 sm:$0xff]  }
 0x24f   :  { %v2569_v6 = vld [vmem:[#allocation16 + $0x134] ss:$8 sps:$4 sm:$0xff]  }
 0x250   :  { %v883_v9 = vmul.f32 %v881_v7, %v881_v7  ;;  %v882_v10 = vsub.f32 %v859_v54, %v880_v8  ;;  %v2545_v54 = vld [vmem:[#allocation16 + $0x174] ss:$8 sps:$4 sm:$0xff]   ;;  %v2567_v8 = vld [vmem:[#allocation16 + $0x130] ss:$8 sps:$4 sm:$0xff]  }
 0x251   :  { %2020 = vmatprep.subr.bf16.mxu1 %v2545_v54  ;;  %v2633_v54 = vld [vmem:[#allocation16 + $0x180] ss:$8 sps:$4 sm:$0xff]  }
 0x252   :  { %v885_v11 = vsel %vm863_vm1, %v883_v9, 0.0  ;;  %v884_v12 = vmul.f32 %v882_v10, %v882_v10  ;;  %v2572_v9 = vld [vmem:[#allocation16 + $0x24] ss:$8 sps:$4 sm:$0xff]  }
 0x253   :  { %v886_v13 = vrot.slane %v885_v11, 4 }
 0x254   :  { %v892_v14 = vsel %vm863_vm1, %v884_v12, 0.0  ;;  %v2573_v12 = vld [vmem:[#allocation16 + $0x120] ss:$8 sps:$4 sm:$0xff]  }
 0x255   :  { %v887_v15 = vadd.f32 %v886_v13, %v885_v11  ;;  %v893_v16 = vrot.slane %v892_v14, 4  ;;  %v2570_v11 = vld [vmem:[#allocation16 + $0x20] ss:$8 sps:$4 sm:$0xff]   ;;  %v2578_v13 = vld [vmem:[#allocation16 + $0x14] ss:$8 sps:$4 sm:$0xff]  }
 0x257   :  { %v888_v17 = vrot.slane %v887_v15, 2  ;;  %v894_v18 = vadd.f32 %v893_v16, %v892_v14  ;;  %v2581_v14 = vld [vmem:[#allocation16 + $0x114] ss:$8 sps:$4 sm:$0xff]   ;;  %v2579_v16 = vld [vmem:[#allocation16 + $0x110] ss:$8 sps:$4 sm:$0xff]  }
 0x259   :  { %v889_v19 = vadd.f32 %v888_v17, %v887_v15  ;;  %v895_v20 = vrot.slane %v894_v18, 2  ;;  %v2576_v15 = vld [vmem:[#allocation16 + $0x10] ss:$8 sps:$4 sm:$0xff]   ;;  %v2584_v17 = vld [vmem:[#allocation16 + $0x4] ss:$8 sps:$4 sm:$0xff]  }
 0x25b   :  { %v890_v21 = vrot.slane %v889_v19, 1  ;;  %v896_v22 = vadd.f32 %v895_v20, %v894_v18  ;;  %v2587_v18 = vld [vmem:[#allocation16 + $0x104] ss:$8 sps:$4 sm:$0xff]   ;;  %v2585_v20 = vld [vmem:[#allocation16 + $0x100] ss:$8 sps:$4 sm:$0xff]  }
 0x25d   :  { %v891_v23 = vadd.f32 %v890_v21, %v889_v19  ;;  %v897_v24 = vrot.slane %v896_v22, 1  ;;  %v2582_v19 = vld [vmem:[#allocation16] ss:$8 sps:$4 sm:$0xff]   ;;  %v2590_v21 = vld [vmem:[#allocation16 + $0xf4] ss:$8 sps:$4 sm:$0xff]  }
 0x25f   :  { %v899_v25 = vmul.f32 0.5, %v891_v23  ;;  %v898_v26 = vadd.f32 %v897_v24, %v896_v22  ;;  %v2593_v22 = vld [vmem:[#allocation16 + $0x1f4] ss:$8 sps:$4 sm:$0xff]   ;;  %v2588_v23 = vld [vmem:[#allocation16 + $0xf0] ss:$8 sps:$4 sm:$0xff]  }
 0x260   :  { %v2591_v24 = vld [vmem:[#allocation16 + $0x1f0] ss:$8 sps:$4 sm:$0xff]  }
 0x261   :  { %v901_v27 = vadd.f32 0.8, %v899_v25  ;;  %v900_v28 = vmul.f32 0.5, %v898_v26  ;;  %v2596_v25 = vld [vmem:[#allocation16 + $0xe4] ss:$8 sps:$4 sm:$0xff]  }
 0x262   :  { %v2599_v26 = vld [vmem:[#allocation16 + $0x1e4] ss:$8 sps:$4 sm:$0xff]  }
 0x263   :  { %2636 = vrsqrt.f32 %v901_v27  ;;  %v902_v30 = vadd.f32 0.8, %v900_v28  ;;  %v2594_v27 = vld [vmem:[#allocation16 + $0xe0] ss:$8 sps:$4 sm:$0xff]  }
 0x264   :  { %v2597_v28 = vld [vmem:[#allocation16 + $0x1e0] ss:$8 sps:$4 sm:$0xff]  }
 0x265   :  { %2638 = vrsqrt.f32 %v902_v30  ;;  %v2602_v30 = vld [vmem:[#allocation16 + $0xd4] ss:$8 sps:$4 sm:$0xff]  }
 0x270   :  { %v2637_v34 = vpop.eup %2636 }
 0x271   :  { %v905_v35 = vmul.f32 %v2637_v34, %v881_v7  ;;  %v2564_v7 = vld [vmem:[#allocation16 + $0x30] ss:$8 sps:$4 sm:$0xff]   ;;  %v2608_v34 = vld [vmem:[#allocation16 + $0xc4] ss:$8 sps:$4 sm:$0xff]  }
 0x272   :  { %v2639_v38 = vpop.eup %2638 }
 0x273   :  { %v919_v39 = vmul.f32 %v912_v33, %v905_v35  ;;  %v906_v40 = vmul.f32 %v2639_v38, %v882_v10  ;;  %v2575_v10 = vld [vmem:[#allocation16 + $0x124] ss:$8 sps:$4 sm:$0xff]   ;;  %v2603_v33 = vld [vmem:[#allocation16 + $0x1d0] ss:$8 sps:$4 sm:$0xff]   ;;  %v2614_v38 = vld [vmem:[#allocation16 + $0xb4] ss:$8 sps:$4 sm:$0xff]  }
 0x274   :  { %v2611_v35 = vld [vmem:[#allocation16 + $0x1c4] ss:$8 sps:$4 sm:$0xff]  }
 0x275   :  { %v933_v42 = vadd.f32 %v926_v36, %v919_v39  ;;  %v920_v43 = vmul.f32 %v916_v37, %v906_v40  ;;  %v2606_v36 = vld [vmem:[#allocation16 + $0xc0] ss:$8 sps:$4 sm:$0xff]   ;;  %v2617_v39 = vld [vmem:[#allocation16 + $0x1b4] ss:$8 sps:$4 sm:$0xff]   ;;  %v2612_v40 = vld [vmem:[#allocation16 + $0xb0] ss:$8 sps:$4 sm:$0xff]  }
 0x276   :  { %v2609_v37 = vld [vmem:[#allocation16 + $0x1c0] ss:$8 sps:$4 sm:$0xff]  }
 0x277   :  { %v934_v44 = vadd.f32 %v930_v41, %v920_v43  ;;  %vm935_vm2 = vcmp.gt.f32.partialorder %v933_v42, 0.0  ;;  %v937_v46 = vmul.f32 0.2, %v933_v42  ;;  %v2615_v41 = vld [vmem:[#allocation16 + $0x1b0] ss:$8 sps:$4 sm:$0xff]  }
 0x278   :  { %v2623_v43 = vld [vmem:[#allocation16 + $0x1a4] ss:$8 sps:$4 sm:$0xff]  }
 0x279   :  { %vm936_vm3 = vcmp.gt.f32.partialorder %v934_v44, 0.0  ;;  %v938_v48 = vmul.f32 0.2, %v934_v44  ;;  %v939_v49 = vsel %vm935_vm2, %v933_v42, %v937_v46  ;;  %v2620_v42 = vld [vmem:[#allocation16 + $0xa4] ss:$8 sps:$4 sm:$0xff]  }
 0x27a   :  { %v941_v52 = vpack.c.bf16 %v939_v49, %v939_v49  ;;  %v2621_v46 = vld [vmem:[#allocation16 + $0x1a0] ss:$8 sps:$4 sm:$0xff]   ;;  %v2629_v49 = vld [vmem:[#allocation16 + $0x194] ss:$8 sps:$4 sm:$0xff]  }
 0x27b   :  { %v940_v50 = vsel %vm936_vm3, %v934_v44, %v938_v48  ;;  %v2618_v44 = vld [vmem:[#allocation16 + $0xa0] ss:$8 sps:$4 sm:$0xff]   ;;  %v2626_v48 = vld [vmem:[#allocation16 + $0x94] ss:$8 sps:$4 sm:$0xff]  }
 0x27c   :  { %v942_v51 = vpack.c.bf16 %v940_v50, %v940_v50  ;;  %v2624_v50 = vld [vmem:[#allocation16 + $0x90] ss:$8 sps:$4 sm:$0xff]  }
 0x27e   :  { %1381 = vmatprep.mubr.bf16.mxu0 %v942_v51  ;;  %1422 = vmatprep.mubr.bf16.mxu1 %v942_v51  ;;  %v2627_v51 = vld [vmem:[#allocation16 + $0x190] ss:$8 sps:$4 sm:$0xff]  }
 0x27f   :  { %1382 = vmatmul.mubr.bf16.vlgmr.msra.gmra.mxu0 %v941_v52  ;;  %1423 = vmatmul.mubr.bf16.vlgmr.msra.gmra.mxu1 %v941_v52  ;;  %v2632_v52 = vld [vmem:[#allocation16 + $0x84] ss:$8 sps:$4 sm:$0xff]  }
 0x280   :  { %1980 = vmatpush1.bf16.msra.mxu0 %v2540_v55  ;;  %2021 = vmatpush1.bf16.msra.mxu1 %v2543_v56  ;;  %v2635_v55 = vld [vmem:[#allocation16 + $0x184] ss:$8 sps:$4 sm:$0xff]   ;;  %v3001_v56 = vsub.s32 2, %v2981_v29 }
 0x281   :  { %1981 = vmatprep.subr.bf16.mxu0 %v2548_v57  ;;  %2022 = vmatprep.subr.bf16.mxu1 %v2551_v58  ;;  %v1007_v57 = vld [vmem:[%s3051_s8] sm:$0xf]  ;;  %v3007_v58 = vsub.s32 3, %v2981_v29 }
 0x284   :  { %1982 = vmatpush1.bf16.msra.mxu0 %v2546_v59  ;;  %2023 = vmatpush1.bf16.msra.mxu1 %v2549_v60  ;;  %v1012_v59 = vrot.slane %v1007_v57, %v2985_v45  ;;  %v1020_v60 = vrot.slane %v1007_v57, %v3001_v56 }
 0x285   :  { %1983 = vmatprep.subr.bf16.mxu0 %v2554_v61  ;;  %2024 = vmatprep.subr.bf16.mxu1 %v2557_v62  ;;  %v1016_v61 = vrot.slane %v1007_v57, %v2988_v47  ;;  %v1024_v62 = vrot.slane %v1007_v57, %v3007_v58 }
 0x288   :  { %1984 = vmatpush1.bf16.msra.mxu0 %v2552_v63  ;;  %2025 = vmatpush1.bf16.msra.mxu1 %v2555_v0 }
 0x289   :  { %1985 = vmatprep.subr.bf16.mxu0 %v2560_v1  ;;  %2026 = vmatprep.subr.bf16.mxu1 %v2563_v2 }
 0x28c   :  { %1986 = vmatpush1.bf16.msra.mxu0 %v2558_v3  ;;  %2027 = vmatpush1.bf16.msra.mxu1 %v2561_v4 }
 0x28d   :  { %1987 = vmatprep.subr.bf16.mxu0 %v2566_v5  ;;  %2028 = vmatprep.subr.bf16.mxu1 %v2569_v6 }
 0x290   :  { %1988 = vmatpush1.bf16.msra.mxu0 %v2564_v7  ;;  %2029 = vmatpush1.bf16.msra.mxu1 %v2567_v8 }
 0x291   :  { %1989 = vmatprep.subr.bf16.mxu0 %v2572_v9  ;;  %2030 = vmatprep.subr.bf16.mxu1 %v2575_v10 }
 0x294   :  { %1990 = vmatpush1.bf16.msra.mxu0 %v2570_v11  ;;  %2031 = vmatpush1.bf16.msra.mxu1 %v2573_v12 }
 0x295   :  { %1991 = vmatprep.subr.bf16.mxu0 %v2578_v13  ;;  %2032 = vmatprep.subr.bf16.mxu1 %v2581_v14 }
 0x298   :  { %1992 = vmatpush1.bf16.msra.mxu0 %v2576_v15  ;;  %2033 = vmatpush1.bf16.msra.mxu1 %v2579_v16 }
 0x299   :  { %1993 = vmatprep.subr.bf16.mxu0 %v2584_v17  ;;  %2034 = vmatprep.subr.bf16.mxu1 %v2587_v18 }
 0x29c   :  { %1994 = vmatpush1.bf16.msra.mxu0 %v2582_v19  ;;  %2035 = vmatpush1.bf16.msra.mxu1 %v2585_v20 }
 0x29d   :  { %1995 = vmatprep.subr.bf16.mxu0 %v2590_v21  ;;  %2036 = vmatprep.subr.bf16.mxu1 %v2593_v22 }
 0x2a0   :  { %1996 = vmatpush2.bf16.msra.mxu0 %v2588_v23  ;;  %2037 = vmatpush2.bf16.msra.mxu1 %v2591_v24 }
 0x2a1   :  { %1997 = vmatprep.subr.bf16.mxu0 %v2596_v25  ;;  %2038 = vmatprep.subr.bf16.mxu1 %v2599_v26 }
 0x2a4   :  { %1998 = vmatpush2.bf16.msra.mxu0 %v2594_v27  ;;  %2039 = vmatpush2.bf16.msra.mxu1 %v2597_v28 }
 0x2a5   :  { %1999 = vmatprep.subr.bf16.mxu0 %v2602_v30  ;;  %2040 = vmatprep.subr.bf16.mxu1 %v2605_v31 }
 0x2a8   :  { %2000 = vmatpush2.bf16.msra.mxu0 %v2600_v32  ;;  %2041 = vmatpush2.bf16.msra.mxu1 %v2603_v33 }
 0x2a9   :  { %2001 = vmatprep.subr.bf16.mxu0 %v2608_v34  ;;  %2042 = vmatprep.subr.bf16.mxu1 %v2611_v35 }
 0x2ac   :  { %2002 = vmatpush2.bf16.msra.mxu0 %v2606_v36  ;;  %2043 = vmatpush2.bf16.msra.mxu1 %v2609_v37 }
 0x2ad   :  { %2003 = vmatprep.subr.bf16.mxu0 %v2614_v38  ;;  %2044 = vmatprep.subr.bf16.mxu1 %v2617_v39 }
 0x2b0   :  { %2004 = vmatpush2.bf16.msra.mxu0 %v2612_v40  ;;  %2045 = vmatpush2.bf16.msra.mxu1 %v2615_v41 }
 0x2b1   :  { %2005 = vmatprep.subr.bf16.mxu0 %v2620_v42  ;;  %2046 = vmatprep.subr.bf16.mxu1 %v2623_v43 }
 0x2b4   :  { %2006 = vmatpush2.bf16.msra.mxu0 %v2618_v44  ;;  %2047 = vmatpush2.bf16.msra.mxu1 %v2621_v46 }
 0x2b5   :  { %2007 = vmatprep.subr.bf16.mxu0 %v2626_v48  ;;  %2048 = vmatprep.subr.bf16.mxu1 %v2629_v49 }
 0x2b8   :  { %2008 = vmatpush2.bf16.msra.mxu0 %v2624_v50  ;;  %2049 = vmatpush2.bf16.msra.mxu1 %v2627_v51 }
 0x2b9   :  { %2009 = vmatprep.subr.bf16.mxu0 %v2632_v52  ;;  %2050 = vmatprep.subr.bf16.mxu1 %v2635_v55 }
 0x2bc   :  { %2010 = vmatpush2.bf16.msra.mxu0 %v2630_v53  ;;  %2051 = vmatpush2.bf16.msra.mxu1 %v2633_v54 }
 0x33f   :  { %v1383_v63 = vpop.f32.mrf.mxu0  ;;  %v1424_v0 = vpop.f32.mrf.mxu1 }
 0x340   :  { %v1384_v1 = vadd.f32 %v1383_v63, %v1012_v59  ;;  %v1425_v2 = vadd.f32 %v1424_v0, %v1020_v60 }
 0x341   :  { %v1385_v3 = vpop.f32.mrf.mxu0  ;;  %v1426_v4 = vpop.f32.mrf.mxu1 }
 0x342   :  { %v1431_v5 = vsel %vm863_vm1, %v1384_v1, 0.0  ;;  %v1445_v6 = vsel %vm863_vm1, %v1425_v2, 0.0  ;;  %v1386_v29 = vadd.f32 %v1385_v3, %v1016_v61  ;;  %v1427_v7 = vadd.f32 %v1426_v4, %v1024_v62 }
 0x343   :  { %v1432_v8 = vrot.slane %v1431_v5, 4  ;;  %v1446_v9 = vrot.slane %v1445_v6, 4  ;;  %v1387_v10 = vpop.f32.mrf.mxu0  ;;  %v1428_v11 = vpop.f32.mrf.mxu1 }
 0x344   :  { %v1438_v12 = vsel %vm863_vm1, %v1386_v29, 0.0  ;;  %v1452_v13 = vsel %vm863_vm1, %v1427_v7, 0.0 }
 0x345   :  { %v1433_v14 = vadd.f32 %v1432_v8, %v1431_v5  ;;  %v1447_v15 = vadd.f32 %v1446_v9, %v1445_v6  ;;  %v1439_v16 = vrot.slane %v1438_v12, 4  ;;  %v1453_v17 = vrot.slane %v1452_v13, 4  ;;  %v1388_v18 = vpop.f32.mrf.mxu0  ;;  %v1429_v19 = vpop.f32.mrf.mxu1 }
 0x347   :  { %v1434_v20 = vrot.slane %v1433_v14, 2  ;;  %v1448_v21 = vrot.slane %v1447_v15, 2  ;;  %v1440_v22 = vadd.f32 %v1439_v16, %v1438_v12  ;;  %v1454_v23 = vadd.f32 %v1453_v17, %v1452_v13 }
 0x349   :  { %v1435_v24 = vadd.f32 %v1434_v20, %v1433_v14  ;;  %v1449_v25 = vadd.f32 %v1448_v21, %v1447_v15  ;;  %v1441_v26 = vrot.slane %v1440_v22, 2  ;;  %v1455_v27 = vrot.slane %v1454_v23, 2 }
 0x34b   :  { %v1436_v28 = vrot.slane %v1435_v24, 1  ;;  %v1450_v30 = vrot.slane %v1449_v25, 1  ;;  %v1442_v31 = vadd.f32 %v1441_v26, %v1440_v22  ;;  %v1456_v32 = vadd.f32 %v1455_v27, %v1454_v23  ;;  %v1515_v26 = vld [vmem:[%s3052_s9] sm:$0xf] }
 0x34c   :  { %v1541_v27 = vld [vmem:[%s3053_s10] sm:$0xf] }
 0x34d   :  { %v1437_v33 = vadd.f32 %v1436_v28, %v1435_v24  ;;  %v1451_v34 = vadd.f32 %v1450_v30, %v1449_v25  ;;  %v1443_v35 = vrot.slane %v1442_v31, 1  ;;  %v1457_v36 = vrot.slane %v1456_v32, 1 }
 0x34e   :  { %v1520_v28 = vrot.slane %v1515_v26, %v2985_v45 }
 0x34f   :  { %v1459_v37 = vmul.f32 0.5, %v1437_v33  ;;  %v1461_v38 = vmul.f32 0.5, %v1451_v34  ;;  %v1444_v39 = vadd.f32 %v1443_v35, %v1442_v31  ;;  %v1458_v40 = vadd.f32 %v1457_v36, %v1456_v32 }
 0x350   :  { %v1528_v31 = vrot.slane %v1515_v26, %v3001_v56  ;;  %v1546_v34 = vrot.slane %v1541_v27, %v2985_v45  ;;  %v1524_v35 = vrot.slane %v1515_v26, %v2988_v47 }
 0x351   :  { %v1463_v41 = vsub.f32 %v1384_v1, %v1459_v37  ;;  %v1465_v42 = vsub.f32 %v1425_v2, %v1461_v38  ;;  %v1460_v43 = vmul.f32 0.5, %v1444_v39  ;;  %v1462_v44 = vmul.f32 0.5, %v1458_v40 }
 0x352   :  { %v1554_v38 = vrot.slane %v1541_v27, %v3001_v56  ;;  %v1532_v39 = vrot.slane %v1515_v26, %v3007_v58 }
 0x353   :  { %v1467_v46 = vmul.f32 %v1463_v41, %v1463_v41  ;;  %v1469_v48 = vmul.f32 %v1465_v42, %v1465_v42  ;;  %v1464_v49 = vsub.f32 %v1386_v29, %v1460_v43  ;;  %v1466_v50 = vsub.f32 %v1427_v7, %v1462_v44 }
 0x355   :  { %v1471_v51 = vsel %vm863_vm1, %v1467_v46, 0.0  ;;  %v1485_v52 = vsel %vm863_vm1, %v1469_v48, 0.0  ;;  %v1468_v53 = vmul.f32 %v1464_v49, %v1464_v49  ;;  %v1470_v54 = vmul.f32 %v1466_v50, %v1466_v50 }
 0x356   :  { %v1472_v55 = vrot.slane %v1471_v51, 4  ;;  %v1486_v57 = vrot.slane %v1485_v52, 4  ;;  %v1550_v46 = vrot.slane %v1541_v27, %v2988_v47 }
 0x357   :  { %v1478_v59 = vsel %vm863_vm1, %v1468_v53, 0.0  ;;  %v1492_v60 = vsel %vm863_vm1, %v1470_v54, 0.0 }
 0x358   :  { %v1473_v61 = vadd.f32 %v1472_v55, %v1471_v51  ;;  %v1487_v62 = vadd.f32 %v1486_v57, %v1485_v52  ;;  %v1479_v63 = vrot.slane %v1478_v59, 4  ;;  %v1493_v0 = vrot.slane %v1492_v60, 4 }
 0x359   :  { %v1558_v52 = vrot.slane %v1541_v27, %v3007_v58 }
 0x35a   :  { %v1474_v1 = vrot.slane %v1473_v61, 2  ;;  %v1488_v2 = vrot.slane %v1487_v62, 2  ;;  %v1480_v3 = vadd.f32 %v1479_v63, %v1478_v59  ;;  %v1494_v4 = vadd.f32 %v1493_v0, %v1492_v60 }
 0x35c   :  { %v1475_v5 = vadd.f32 %v1474_v1, %v1473_v61  ;;  %v1489_v6 = vadd.f32 %v1488_v2, %v1487_v62  ;;  %v1481_v29 = vrot.slane %v1480_v3, 2  ;;  %v1495_v7 = vrot.slane %v1494_v4, 2 }
 0x35e   :  { %v1476_v8 = vrot.slane %v1475_v5, 1  ;;  %v1490_v9 = vrot.slane %v1489_v6, 1  ;;  %v1482_v10 = vadd.f32 %v1481_v29, %v1480_v3  ;;  %v1496_v11 = vadd.f32 %v1495_v7, %v1494_v4  ;;  %v1647_v3 = vld [vmem:[%s3055_s12] sm:$0x3]  ;;  %s2828_s12 = scalar_lea.vmem %s2080_s1, 64 }
 0x35f   :  { %v1652_v4 = vrot.slane %v1647_v3, %v2985_v45  ;;  %p2829_p3 = scmp.ne.s32.totalorder %s2080_s1, %s2828_s12  ;;  %p2834_p5 = scmp.lt.s32.totalorder %s2828_s12, %s2828_s12 }
 0x360   :  { %v1477_v12 = vadd.f32 %v1476_v8, %v1475_v5  ;;  %v1491_v13 = vadd.f32 %v1490_v9, %v1489_v6  ;;  %v1483_v14 = vrot.slane %v1482_v10, 1  ;;  %v1497_v15 = vrot.slane %v1496_v11, 1 }
 0x361   :  { %v1656_v5 = vrot.slane %v1647_v3, %v2988_v47  ;;  %p2835_p6 = por %p2834_p5, %p2833_p4 }
 0x362   :  { %v1499_v16 = vmul.f32 0.5, %v1477_v12  ;;  %v1501_v17 = vmul.f32 0.5, %v1491_v13  ;;  %v1484_v18 = vadd.f32 %v1483_v14, %v1482_v10  ;;  %v1498_v19 = vadd.f32 %v1497_v15, %v1496_v11 }
 0x363   :  { %p2836_p7 = pnand %p2835_p6, %p2829_p3 }
 0x364   :  { %v1503_v20 = vadd.f32 0.8, %v1499_v16  ;;  %v1505_v21 = vadd.f32 0.8, %v1501_v17  ;;  %v1500_v22 = vmul.f32 0.5, %v1484_v18  ;;  %v1502_v23 = vmul.f32 0.5, %v1498_v19 }
 0x366   :  { %2640 = vrsqrt.f32 %v1503_v20  ;;  %v1504_v24 = vadd.f32 0.8, %v1500_v22  ;;  %v1506_v25 = vadd.f32 0.8, %v1502_v23 }
 0x367   :  { %2642 = vrsqrt.f32 %v1505_v21 }
 0x368   :  { %2644 = vrsqrt.f32 %v1504_v24 }
 0x369   :  { %2646 = vrsqrt.f32 %v1506_v25 }
 0x373   :  { %v2641_v30 = vpop.eup %2640 }
 0x374   :  { %v2643_v32 = vpop.eup %2642  ;;  %v1511_v33 = vmul.f32 %v2641_v30, %v1463_v41 }
 0x375   :  { %v2645_v36 = vpop.eup %2644  ;;  %v1513_v37 = vmul.f32 %v2643_v32, %v1465_v42 }
 0x376   :  { %v2647_v40 = vpop.eup %2646  ;;  %v1537_v43 = vmul.f32 %v1520_v28, %v1511_v33  ;;  %v1512_v44 = vmul.f32 %v2645_v36, %v1464_v49 }
 0x377   :  { %v1539_v48 = vmul.f32 %v1528_v31, %v1513_v37  ;;  %v1514_v51 = vmul.f32 %v2647_v40, %v1466_v50 }
 0x378   :  { %v1563_v41 = vadd.f32 %v1546_v34, %v1537_v43  ;;  %v1538_v53 = vmul.f32 %v1524_v35, %v1512_v44 }
 0x379   :  { %v1565_v54 = vadd.f32 %v1554_v38, %v1539_v48  ;;  %v1540_v55 = vmul.f32 %v1532_v39, %v1514_v51 }
 0x37a   :  { %v1564_v57 = vadd.f32 %v1550_v46, %v1538_v53  ;;  %vm1567_vm4 = vcmp.gt.f32.partialorder %v1563_v41, 0.0  ;;  %v1571_v42 = vmul.f32 0.2, %v1563_v41 }
 0x37b   :  { %v1566_v59 = vadd.f32 %v1558_v52, %v1540_v55  ;;  %vm1569_vm5 = vcmp.gt.f32.partialorder %v1565_v54, 0.0  ;;  %v1573_v56 = vmul.f32 0.2, %v1565_v54 }
 0x37c   :  { %vm1568_vm6 = vcmp.gt.f32.partialorder %v1564_v57, 0.0  ;;  %v1572_v60 = vmul.f32 0.2, %v1564_v57  ;;  %v1575_v61 = vsel %vm1567_vm4, %v1563_v41, %v1571_v42 }
 0x37d   :  { %vm1570_vm7 = vcmp.gt.f32.partialorder %v1566_v59, 0.0  ;;  %v1574_v49 = vmul.f32 0.2, %v1566_v59  ;;  %v1577_v63 = vsel %vm1569_vm5, %v1565_v54, %v1573_v56  ;;  %v1579_v1 = vpack.c.bf16 %v1575_v61, %v1575_v61 }
 0x37e   :  { %v1576_v62 = vsel %vm1568_vm6, %v1564_v57, %v1572_v60  ;;  %v1581_v2 = vpack.c.bf16 %v1577_v63, %v1577_v63 }
 0x37f   :  { %v1580_v50 = vpack.c.bf16 %v1576_v62, %v1576_v62  ;;  %v1578_v0 = vsel %vm1570_vm7, %v1566_v59, %v1574_v49 }
 0x380   :  { %v1582_v58 = vpack.c.bf16 %v1578_v0, %v1578_v0 }
 0x381   :  { %2011 = vmatprep.mubr.bf16.mxu0 %v1580_v50 }
 0x382   :  { %2052 = vmatprep.mubr.bf16.mxu1 %v1582_v58  ;;  %2012 = vmatmul.mubr.bf16.vlgmr.msra.gmra.mxu0 %v1579_v1 }
 0x383   :  { %2053 = vmatmul.mubr.bf16.vlgmr.msra.gmra.mxu1 %v1581_v2 }
 0x442   :  { %v2013_v6 = vpop.f32.mrf.mxu0 }
 0x443   :  { %v2014_v29 = vadd.f32 %v2013_v6, %v1652_v4  ;;  %v2054_v7 = vpop.f32.mrf.mxu1 }
 0x444   :  { %v2015_v8 = vpop.f32.mrf.mxu0 }
 0x445   :  { %v2016_v9 = vadd.f32 %v2015_v8, %v1656_v5  ;;  %v2056_v10 = vpop.f32.mrf.mxu1  ;;  %v2055_v12 = vadd.f32 %v2054_v7, %v2014_v29 }
 0x446   :  { %v2017_v11 = vpop.f32.mrf.mxu0 }
 0x447   :  { %v2057_v13 = vadd.f32 %v2056_v10, %v2016_v9  ;;  %v2058_v14 = vpop.f32.mrf.mxu1 }
 0x448   :  { %v2018_v15 = vpop.f32.mrf.mxu0 }
 0x449   :  { %v2063_v16 = vcombine.low %v2055_v12, %v2057_v13  ;;  %v2059_v17 = vpop.f32.mrf.mxu1 }
 0x44b   :  { %2286 = vst.sshfl [vmem:[#allocation17] sm:$0x33 pattern:$0x76325410] %v2063_v16 }
 0x44c   :  { %2839 = shalt.err (!%p2836_p7)
}
 0x44d   :  { %2082 = dma.vmem_to_hbm [thread:$0]  %s2080_s1, 64, %s3056_s13, [#allocation4]  }
 0x44e   :  { %2858 = dma.done.wait [#allocation4], 64  }
 0x44f   :  { %2859 = vsyncadd [#allocation4], 4294967232 }
 0x450   :  { %2086 = vsyncpa [#allocation3], 1 }
 0x451   :  { %2087 = vsyncpa [#allocation6], 1 }
 0x452   :  { %2088 = vsyncpa [#allocation9], 1 }
 0x453   :  { %2089 = vsyncpa [#allocation12], 1 }
 0x454   :  { %2090 = vsyncpa [#allocation15], 1 }
 0x455   :  { %2091 = vsyncpa [#allocation4], 1 }

</bundles_post_ra>
